<compile_context>
chip_gen: v5e
topology: v5e:2x2
jax: 0.10.0
libtpu: 0.0.40
codegen_flags: <defaults>
</compile_context>

<pallas_src>
import functools

import jax
import jax.numpy as jnp
from jax.experimental import pallas as pl
from jax.experimental.pallas import tpu as pltpu


# ----------------------------- kernel helpers -------------------------------
def _pad1(x3d):
    """Zero-pad an (H, W, C) value by 1 on both spatial dims (in-kernel)."""
    h, w, c = x3d.shape
    zrow = jnp.zeros((1, w, c), x3d.dtype)
    xc = jnp.concatenate([zrow, x3d, zrow], axis=0)            # (H+2, W, C)
    zcol = jnp.zeros((h + 2, 1, c), x3d.dtype)
    return jnp.concatenate([zcol, xc, zcol], axis=1)           # (H+2, W+2, C)


def _conv3x3(xp, w_ref, h, w, cout):
    """3x3 / stride-1 conv of a padded tile as ONE MXU contraction.

    xp:    (h+2, w+2, cin) bf16 value.
    w_ref: (9*cin, cout) weight-slab ref, rows ordered (kh, kw, cin), BN scale
           already folded in.
    Returns an (h*w, cout) float32 accumulator.  Builds the full im2col patch
    matrix (lane-dim concat over kw, then kh) so the conv is a single matmul
    with K = 9*cin instead of many thin contractions.
    """
    cin = xp.shape[-1]
    # lane-dim im2col over kw: (h+2, w, 3*cin)
    cols = jnp.concatenate([xp[:, kw:kw + w, :] for kw in range(3)], axis=-1)
    # lane-dim im2col over kh: (h, w, 9*cin); index (kh*3 + kw)*cin + ci
    patches = jnp.concatenate([cols[kh:kh + h] for kh in range(3)], axis=-1)
    lhs = patches.reshape(h * w, 9 * cin)
    return jnp.dot(lhs, w_ref[...], preferred_element_type=jnp.float32)


def _basic_block_kernel(x_ref, w1_ref, b1_ref, w2_ref, b2_ref, o_ref,
                        *, H, W, Cmid, Cout, lane_dense_out):
    """relu( conv2(relu(conv1(x)*s1+b1))*s2 + b2 + x )   (scales in weights)."""
    x = x_ref[0]                                               # (H, W, Cin) bf16

    # conv1 -> bn1 (scale pre-folded into w1) -> relu
    y1 = _conv3x3(_pad1(x), w1_ref, H, W, Cmid) + b1_ref[...]
    y1 = jnp.maximum(y1, 0.0)                                  # (H*W, Cmid) f32
    y1 = y1.reshape(H, W, Cmid).astype(jnp.bfloat16)           # stays on-chip

    # conv2 -> bn2 -> + residual (from the same input block) -> relu
    out = _conv3x3(_pad1(y1), w2_ref, H, W, Cout) + b2_ref[...]
    out = out + x.astype(jnp.float32).reshape(H * W, Cout)
    out = jnp.maximum(out, 0.0)

    if lane_dense_out:
        # lane-dense store: last output dim W*Cout is a multiple of 128.
        o_ref[0] = out.reshape(H, W * Cout)
    else:
        o_ref[0] = out.reshape(H, W, Cout)


# ------------------------------ host helpers --------------------------------
def _weight_slab(w_oihw):
    """(Cout, Cin, 3, 3) -> (9*Cin, Cout); row index = (kh*3 + kw)*Cin + ci."""
    cout, cin = w_oihw.shape[0], w_oihw.shape[1]
    return jnp.transpose(w_oihw, (2, 3, 1, 0)).reshape(9 * cin, cout)


def _fold_bn(gamma, beta, mean, var, eps):
    scale = gamma / jnp.sqrt(var + eps)
    return scale, beta - mean * scale


def basic_block_forward(x_nchw, params, lane_dense_out=True):
    """Fused Pallas BasicBlock.forward (stride=1, downsample=None), NCHW i/o."""
    x = jnp.transpose(x_nchw, (0, 2, 3, 1))                    # NCHW -> NHWC
    N, H, W, Cin = x.shape
    Cmid = params["w1"].shape[0]
    Cout = params["w2"].shape[0]
    assert Cin == Cout, "BasicBlock without downsample needs Cin == Cout"

    s1, b1 = _fold_bn(params["g1"], params["be1"], params["m1"], params["v1"],
                      params["eps"])
    s2, b2 = _fold_bn(params["g2"], params["be2"], params["m2"], params["v2"],
                      params["eps"])

    # Fold the BN scale into the conv weights (host side) and cast the MXU
    # operands to bf16; the BN bias stays f32 for the in-kernel epilogue.
    w1 = (_weight_slab(params["w1"]) * s1[None, :]).astype(jnp.bfloat16)
    w2 = (_weight_slab(params["w2"]) * s2[None, :]).astype(jnp.bfloat16)
    xb = x.astype(jnp.bfloat16)

    kernel = functools.partial(_basic_block_kernel, H=H, W=W, Cmid=Cmid,
                               Cout=Cout, lane_dense_out=lane_dense_out)

    if lane_dense_out:
        out_shape = jax.ShapeDtypeStruct((N, H, W * Cout), jnp.float32)
        out_spec = pl.BlockSpec((1, H, W * Cout), lambda n: (n, 0, 0))
    else:
        out_shape = jax.ShapeDtypeStruct((N, H, W, Cout), jnp.float32)
        out_spec = pl.BlockSpec((1, H, W, Cout), lambda n: (n, 0, 0, 0))

    out = pl.pallas_call(
        kernel,
        out_shape=out_shape,
        grid_spec=pltpu.PrefetchScalarGridSpec(
            num_scalar_prefetch=0,
            grid=(N,),
            in_specs=[
                pl.BlockSpec((1, H, W, Cin), lambda n: (n, 0, 0, 0)),
                pl.BlockSpec((9 * Cin, Cmid), lambda n: (0, 0)),
                pl.BlockSpec((1, Cmid), lambda n: (0, 0)),
                pl.BlockSpec((9 * Cmid, Cout), lambda n: (0, 0)),
                pl.BlockSpec((1, Cout), lambda n: (0, 0)),
            ],
            out_specs=out_spec,
        ),
        compiler_params=pltpu.CompilerParams(
            dimension_semantics=("parallel",),       # v7x: 2 TCs split batch
            vmem_limit_bytes=32 * 1024 * 1024),      # explicit, fits all gens
    )(xb, w1, b1.reshape(1, Cmid), w2, b2.reshape(1, Cout))

    out = out.reshape(N, H, W, Cout)
    return jnp.transpose(out, (0, 3, 1, 2))                    # NHWC -> NCHW


# ----------------------- references for correctness -------------------------
def _conv_nhwc(xh, w_hwio):
    return jax.lax.conv_general_dilated(
        xh, w_hwio, (1, 1), ((1, 1), (1, 1)),
        dimension_numbers=("NHWC", "HWIO", "NHWC"),
        preferred_element_type=jnp.float32)


def _ref_forward_f32(x_nchw, params):
    """Pure-f32 reference (exact module semantics, inference BN)."""
    x = jnp.transpose(x_nchw, (0, 2, 3, 1))
    s1, b1 = _fold_bn(params["g1"], params["be1"], params["m1"], params["v1"],
                      params["eps"])
    s2, b2 = _fold_bn(params["g2"], params["be2"], params["m2"], params["v2"],
                      params["eps"])
    w1 = jnp.transpose(params["w1"], (2, 3, 1, 0))
    w2 = jnp.transpose(params["w2"], (2, 3, 1, 0))
    out = jnp.maximum(_conv_nhwc(x, w1) * s1 + b1, 0.0)
    out = _conv_nhwc(out, w2) * s2 + b2 + x
    out = jnp.maximum(out, 0.0)
    return jnp.transpose(out, (0, 3, 1, 2))


def _ref_forward_bf16(x_nchw, params):
    """Reference matching the kernel's bf16-operand / f32-accumulate numerics."""
    x = jnp.transpose(x_nchw, (0, 2, 3, 1)).astype(jnp.bfloat16)
    s1, b1 = _fold_bn(params["g1"], params["be1"], params["m1"], params["v1"],
                      params["eps"])
    s2, b2 = _fold_bn(params["g2"], params["be2"], params["m2"], params["v2"],
                      params["eps"])
    w1 = (jnp.transpose(params["w1"], (2, 3, 1, 0)) * s1).astype(jnp.bfloat16)
    w2 = (jnp.transpose(params["w2"], (2, 3, 1, 0)) * s2).astype(jnp.bfloat16)
    y = jnp.maximum(_conv_nhwc(x, w1) + b1, 0.0).astype(jnp.bfloat16)
    out = jnp.maximum(_conv_nhwc(y, w2) + b2 + x.astype(jnp.float32), 0.0)
    return jnp.transpose(out, (0, 3, 1, 2))


# ----------------------------------- main ------------------------------------
if __name__ == "__main__":
    # batch=2, inplanes=planes=8 (residual add needs equal channels since
    # downsample=None), spatial=16x16  ->  lane-dense out last dim = 128.
    N, C, H, W = 2, 8, 16, 16
    key = jax.random.PRNGKey(0)
    k = jax.random.split(key, 8)

    x = jax.random.normal(k[0], (N, C, H, W), jnp.float32)

    params = {
        "w1": jax.random.normal(k[1], (C, C, 3, 3), jnp.float32) * 0.1,
        "w2": jax.random.normal(k[2], (C, C, 3, 3), jnp.float32) * 0.1,
        "g1": 1.0 + 0.1 * jax.random.normal(k[3], (C,), jnp.float32),
        "be1": 0.1 * jax.random.normal(k[4], (C,), jnp.float32),
        "m1": jnp.zeros((C,), jnp.float32),
        "v1": jnp.ones((C,), jnp.float32),
        "g2": 1.0 + 0.1 * jax.random.normal(k[5], (C,), jnp.float32),
        "be2": 0.1 * jax.random.normal(k[6], (C,), jnp.float32),
        "m2": jnp.zeros((C,), jnp.float32),
        "v2": jnp.ones((C,), jnp.float32),
        "eps": 1e-5,
    }

    try:
        fwd = jax.jit(functools.partial(basic_block_forward,
                                        lane_dense_out=True))
        out = jax.block_until_ready(fwd(x, params))
    except Exception:
        # Fallback (4D NHWC output block) for compiler versions without
        # lane-merging reshape support; keeps the kernel runnable.
        fwd = jax.jit(functools.partial(basic_block_forward,
                                        lane_dense_out=False))
        out = jax.block_until_ready(fwd(x, params))

    assert out.shape == (N, C, H, W)

    ref_b = jax.block_until_ready(_ref_forward_bf16(x, params))
    ref_f = jax.block_until_ready(_ref_forward_f32(x, params))

    err_matched = float(jnp.max(jnp.abs(out - ref_b)))
    err_f32 = float(jnp.max(jnp.abs(out - ref_f)))
    # Tight check against a reference with identical bf16-operand numerics,
    # loose check against the pure-f32 module semantics.
    assert jnp.allclose(out, ref_b, atol=1e-2, rtol=1e-2), err_matched
    assert jnp.allclose(out, ref_f, atol=6e-2, rtol=6e-2), err_f32

    print("KERNEL_OK")
</pallas_src>

<mosaic_0001>
module attributes {stable_mosaic.version = 11 : i64} {
  func.func @_basic_block_kernel(%arg0: i32, %arg1: memref<1x16x16x8xbf16, #tpu.memory_space<vmem>>, %arg2: memref<72x8xbf16, #tpu.memory_space<vmem>>, %arg3: memref<1x8xf32, #tpu.memory_space<vmem>>, %arg4: memref<72x8xbf16, #tpu.memory_space<vmem>>, %arg5: memref<1x8xf32, #tpu.memory_space<vmem>>, %arg6: memref<1x16x128xf32, #tpu.memory_space<vmem>>) attributes {dimension_semantics = [#tpu.dimension_semantics<parallel>], iteration_bounds = array<i64: 2>, scalar_prefetch = 0 : i64, scratch_operands = 0 : i64, tpu.core_type = #tpu.core_type<tc>, window_params = [{transform_indices = @transform_0, window_bounds = array<i64: 1, 16, 16, 8>}, {pipeline_mode = #tpu.pipeline_mode<synchronous>, transform_indices = @transform_1, window_bounds = array<i64: 72, 8>}, {pipeline_mode = #tpu.pipeline_mode<synchronous>, transform_indices = @transform_2, window_bounds = array<i64: 1, 8>}, {pipeline_mode = #tpu.pipeline_mode<synchronous>, transform_indices = @transform_3, window_bounds = array<i64: 72, 8>}, {pipeline_mode = #tpu.pipeline_mode<synchronous>, transform_indices = @transform_4, window_bounds = array<i64: 1, 8>}, {transform_indices = @transform_5, window_bounds = array<i64: 1, 16, 128>}]} {
    %c0 = arith.constant 0 : index
    %c0_0 = arith.constant 0 : index
    %c0_1 = arith.constant 0 : index
    %c0_2 = arith.constant 0 : index
    %0 = vector.load %arg1[%c0, %c0_0, %c0_1, %c0_2] : memref<1x16x16x8xbf16, #tpu.memory_space<vmem>>, vector<1x16x16x8xbf16>
    %1 = vector.shape_cast %0 : vector<1x16x16x8xbf16> to vector<16x16x8xbf16>
    %cst = arith.constant 0.000000e+00 : bf16
    %2 = vector.broadcast %cst : bf16 to vector<1x16x8xbf16>
    %3 = tpu.concatenate %2, %1, %2 in 0 : vector<1x16x8xbf16>, vector<16x16x8xbf16>, vector<1x16x8xbf16> -> vector<18x16x8xbf16>
    %cst_3 = arith.constant 0.000000e+00 : bf16
    %4 = vector.broadcast %cst_3 : bf16 to vector<18x1x8xbf16>
    %5 = tpu.concatenate %4, %3, %4 in 1 : vector<18x1x8xbf16>, vector<18x16x8xbf16>, vector<18x1x8xbf16> -> vector<18x18x8xbf16>
    %6 = vector.extract_strided_slice %5 {offsets = [0, 0, 0], sizes = [18, 16, 8], strides = [1, 1, 1]} : vector<18x18x8xbf16> to vector<18x16x8xbf16>
    %7 = vector.extract_strided_slice %5 {offsets = [0, 1, 0], sizes = [18, 16, 8], strides = [1, 1, 1]} : vector<18x18x8xbf16> to vector<18x16x8xbf16>
    %8 = vector.extract_strided_slice %5 {offsets = [0, 2, 0], sizes = [18, 16, 8], strides = [1, 1, 1]} : vector<18x18x8xbf16> to vector<18x16x8xbf16>
    %9 = tpu.concatenate %6, %7, %8 in 2 : vector<18x16x8xbf16>, vector<18x16x8xbf16>, vector<18x16x8xbf16> -> vector<18x16x24xbf16>
    %10 = vector.extract_strided_slice %9 {offsets = [0, 0, 0], sizes = [16, 16, 24], strides = [1, 1, 1]} : vector<18x16x24xbf16> to vector<16x16x24xbf16>
    %11 = vector.extract_strided_slice %9 {offsets = [1, 0, 0], sizes = [16, 16, 24], strides = [1, 1, 1]} : vector<18x16x24xbf16> to vector<16x16x24xbf16>
    %12 = vector.extract_strided_slice %9 {offsets = [2, 0, 0], sizes = [16, 16, 24], strides = [1, 1, 1]} : vector<18x16x24xbf16> to vector<16x16x24xbf16>
    %13 = tpu.concatenate %10, %11, %12 in 2 : vector<16x16x24xbf16>, vector<16x16x24xbf16>, vector<16x16x24xbf16> -> vector<16x16x72xbf16>
    %14 = vector.shape_cast %13 : vector<16x16x72xbf16> to vector<256x72xbf16>
    %c0_4 = arith.constant 0 : index
    %c0_5 = arith.constant 0 : index
    %15 = vector.load %arg2[%c0_4, %c0_5] : memref<72x8xbf16, #tpu.memory_space<vmem>>, vector<72x8xbf16>
    %cst_6 = arith.constant dense<0.000000e+00> : vector<256x8xf32>
    %16 = tpu.matmul %14, %15, %cst_6 {dimension_numbers = #tpu.dot_dimension_numbers<[1], [0], [0], [1], [0, 0, 1, 1], [], []>} : vector<256x72xbf16>, vector<72x8xbf16>, vector<256x8xf32> -> vector<256x8xf32>
    %c0_7 = arith.constant 0 : index
    %c0_8 = arith.constant 0 : index
    %17 = vector.load %arg3[%c0_7, %c0_8] : memref<1x8xf32, #tpu.memory_space<vmem>>, vector<1x8xf32>
    %18 = vector.broadcast %17 : vector<1x8xf32> to vector<256x8xf32>
    %19 = arith.addf %16, %18 : vector<256x8xf32>
    %cst_9 = arith.constant 0.000000e+00 : f32
    %20 = vector.broadcast %cst_9 : f32 to vector<256x8xf32>
    %21 = arith.maximumf %19, %20 : vector<256x8xf32>
    %22 = vector.shape_cast %21 : vector<256x8xf32> to vector<16x16x8xf32>
    %23 = arith.truncf %22 : vector<16x16x8xf32> to vector<16x16x8xbf16>
    %cst_10 = arith.constant 0.000000e+00 : bf16
    %24 = vector.broadcast %cst_10 : bf16 to vector<1x16x8xbf16>
    %25 = tpu.concatenate %24, %23, %24 in 0 : vector<1x16x8xbf16>, vector<16x16x8xbf16>, vector<1x16x8xbf16> -> vector<18x16x8xbf16>
    %cst_11 = arith.constant 0.000000e+00 : bf16
    %26 = vector.broadcast %cst_11 : bf16 to vector<18x1x8xbf16>
    %27 = tpu.concatenate %26, %25, %26 in 1 : vector<18x1x8xbf16>, vector<18x16x8xbf16>, vector<18x1x8xbf16> -> vector<18x18x8xbf16>
    %28 = vector.extract_strided_slice %27 {offsets = [0, 0, 0], sizes = [18, 16, 8], strides = [1, 1, 1]} : vector<18x18x8xbf16> to vector<18x16x8xbf16>
    %29 = vector.extract_strided_slice %27 {offsets = [0, 1, 0], sizes = [18, 16, 8], strides = [1, 1, 1]} : vector<18x18x8xbf16> to vector<18x16x8xbf16>
    %30 = vector.extract_strided_slice %27 {offsets = [0, 2, 0], sizes = [18, 16, 8], strides = [1, 1, 1]} : vector<18x18x8xbf16> to vector<18x16x8xbf16>
    %31 = tpu.concatenate %28, %29, %30 in 2 : vector<18x16x8xbf16>, vector<18x16x8xbf16>, vector<18x16x8xbf16> -> vector<18x16x24xbf16>
    %32 = vector.extract_strided_slice %31 {offsets = [0, 0, 0], sizes = [16, 16, 24], strides = [1, 1, 1]} : vector<18x16x24xbf16> to vector<16x16x24xbf16>
    %33 = vector.extract_strided_slice %31 {offsets = [1, 0, 0], sizes = [16, 16, 24], strides = [1, 1, 1]} : vector<18x16x24xbf16> to vector<16x16x24xbf16>
    %34 = vector.extract_strided_slice %31 {offsets = [2, 0, 0], sizes = [16, 16, 24], strides = [1, 1, 1]} : vector<18x16x24xbf16> to vector<16x16x24xbf16>
    %35 = tpu.concatenate %32, %33, %34 in 2 : vector<16x16x24xbf16>, vector<16x16x24xbf16>, vector<16x16x24xbf16> -> vector<16x16x72xbf16>
    %36 = vector.shape_cast %35 : vector<16x16x72xbf16> to vector<256x72xbf16>
    %c0_12 = arith.constant 0 : index
    %c0_13 = arith.constant 0 : index
    %37 = vector.load %arg4[%c0_12, %c0_13] : memref<72x8xbf16, #tpu.memory_space<vmem>>, vector<72x8xbf16>
    %cst_14 = arith.constant dense<0.000000e+00> : vector<256x8xf32>
    %38 = tpu.matmul %36, %37, %cst_14 {dimension_numbers = #tpu.dot_dimension_numbers<[1], [0], [0], [1], [0, 0, 1, 1], [], []>} : vector<256x72xbf16>, vector<72x8xbf16>, vector<256x8xf32> -> vector<256x8xf32>
    %c0_15 = arith.constant 0 : index
    %c0_16 = arith.constant 0 : index
    %39 = vector.load %arg5[%c0_15, %c0_16] : memref<1x8xf32, #tpu.memory_space<vmem>>, vector<1x8xf32>
    %40 = vector.broadcast %39 : vector<1x8xf32> to vector<256x8xf32>
    %41 = arith.addf %38, %40 : vector<256x8xf32>
    %42 = arith.extf %1 : vector<16x16x8xbf16> to vector<16x16x8xf32>
    %43 = vector.shape_cast %42 : vector<16x16x8xf32> to vector<256x8xf32>
    %44 = arith.addf %41, %43 : vector<256x8xf32>
    %cst_17 = arith.constant 0.000000e+00 : f32
    %45 = vector.broadcast %cst_17 : f32 to vector<256x8xf32>
    %46 = arith.maximumf %44, %45 : vector<256x8xf32>
    %47 = vector.shape_cast %46 : vector<256x8xf32> to vector<16x128xf32>
    %c0_18 = arith.constant 0 : index
    %c0_19 = arith.constant 0 : index
    %c0_20 = arith.constant 0 : index
    %48 = vector.load %arg6[%c0_18, %c0_19, %c0_20] : memref<1x16x128xf32, #tpu.memory_space<vmem>>, vector<1x16x128xf32>
    %49 = vector.shape_cast %48 : vector<1x16x128xf32> to vector<16x128xf32>
    %50 = vector.shape_cast %47 : vector<16x128xf32> to vector<1x16x128xf32>
    tpu.vector_store %arg6[%c0_18, %c0_19, %c0_20], %50 {strides = array<i32>} : memref<1x16x128xf32, #tpu.memory_space<vmem>>, vector<1x16x128xf32>,
    return
  }
  func.func @transform_0(%arg0: i32) -> (i32, i32, i32, i32) {
    %c0_i32 = arith.constant 0 : i32
    %c0_i32_0 = arith.constant 0 : i32
    %c0_i32_1 = arith.constant 0 : i32
    %c0_i32_2 = arith.constant 0 : i32
    return %arg0, %c0_i32, %c0_i32_0, %c0_i32_1 : i32, i32, i32, i32
  }
  func.func @transform_1(%arg0: i32) -> (i32, i32) {
    %c0_i32 = arith.constant 0 : i32
    %c0_i32_0 = arith.constant 0 : i32
    %c0_i32_1 = arith.constant 0 : i32
    return %c0_i32, %c0_i32_0 : i32, i32
  }
  func.func @transform_2(%arg0: i32) -> (i32, i32) {
    %c0_i32 = arith.constant 0 : i32
    %c0_i32_0 = arith.constant 0 : i32
    %c0_i32_1 = arith.constant 0 : i32
    return %c0_i32, %c0_i32_0 : i32, i32
  }
  func.func @transform_3(%arg0: i32) -> (i32, i32) {
    %c0_i32 = arith.constant 0 : i32
    %c0_i32_0 = arith.constant 0 : i32
    %c0_i32_1 = arith.constant 0 : i32
    return %c0_i32, %c0_i32_0 : i32, i32
  }
  func.func @transform_4(%arg0: i32) -> (i32, i32) {
    %c0_i32 = arith.constant 0 : i32
    %c0_i32_0 = arith.constant 0 : i32
    %c0_i32_1 = arith.constant 0 : i32
    return %c0_i32, %c0_i32_0 : i32, i32
  }
  func.func @transform_5(%arg0: i32) -> (i32, i32, i32) {
    %c0_i32 = arith.constant 0 : i32
    %c0_i32_0 = arith.constant 0 : i32
    %c0_i32_1 = arith.constant 0 : i32
    return %arg0, %c0_i32, %c0_i32_0 : i32, i32, i32
  }
}

module attributes {stable_mosaic.version = 11 : i64} {
  func.func @_basic_block_kernel(%arg0: i32, %arg1: memref<1x16x16x8xbf16, #tpu.memory_space<vmem>>, %arg2: memref<72x8xbf16, #tpu.memory_space<vmem>>, %arg3: memref<1x8xf32, #tpu.memory_space<vmem>>, %arg4: memref<72x8xbf16, #tpu.memory_space<vmem>>, %arg5: memref<1x8xf32, #tpu.memory_space<vmem>>, %arg6: memref<1x16x16x8xf32, #tpu.memory_space<vmem>>) attributes {dimension_semantics = [#tpu.dimension_semantics<parallel>], iteration_bounds = array<i64: 2>, scalar_prefetch = 0 : i64, scratch_operands = 0 : i64, tpu.core_type = #tpu.core_type<tc>, window_params = [{transform_indices = @transform_0, window_bounds = array<i64: 1, 16, 16, 8>}, {pipeline_mode = #tpu.pipeline_mode<synchronous>, transform_indices = @transform_1, window_bounds = array<i64: 72, 8>}, {pipeline_mode = #tpu.pipeline_mode<synchronous>, transform_indices = @transform_2, window_bounds = array<i64: 1, 8>}, {pipeline_mode = #tpu.pipeline_mode<synchronous>, transform_indices = @transform_3, window_bounds = array<i64: 72, 8>}, {pipeline_mode = #tpu.pipeline_mode<synchronous>, transform_indices = @transform_4, window_bounds = array<i64: 1, 8>}, {transform_indices = @transform_5, window_bounds = array<i64: 1, 16, 16, 8>}]} {
    %c0 = arith.constant 0 : index
    %c0_0 = arith.constant 0 : index
    %c0_1 = arith.constant 0 : index
    %c0_2 = arith.constant 0 : index
    %0 = vector.load %arg1[%c0, %c0_0, %c0_1, %c0_2] : memref<1x16x16x8xbf16, #tpu.memory_space<vmem>>, vector<1x16x16x8xbf16>
    %1 = vector.shape_cast %0 : vector<1x16x16x8xbf16> to vector<16x16x8xbf16>
    %cst = arith.constant 0.000000e+00 : bf16
    %2 = vector.broadcast %cst : bf16 to vector<1x16x8xbf16>
    %3 = tpu.concatenate %2, %1, %2 in 0 : vector<1x16x8xbf16>, vector<16x16x8xbf16>, vector<1x16x8xbf16> -> vector<18x16x8xbf16>
    %cst_3 = arith.constant 0.000000e+00 : bf16
    %4 = vector.broadcast %cst_3 : bf16 to vector<18x1x8xbf16>
    %5 = tpu.concatenate %4, %3, %4 in 1 : vector<18x1x8xbf16>, vector<18x16x8xbf16>, vector<18x1x8xbf16> -> vector<18x18x8xbf16>
    %6 = vector.extract_strided_slice %5 {offsets = [0, 0, 0], sizes = [18, 16, 8], strides = [1, 1, 1]} : vector<18x18x8xbf16> to vector<18x16x8xbf16>
    %7 = vector.extract_strided_slice %5 {offsets = [0, 1, 0], sizes = [18, 16, 8], strides = [1, 1, 1]} : vector<18x18x8xbf16> to vector<18x16x8xbf16>
    %8 = vector.extract_strided_slice %5 {offsets = [0, 2, 0], sizes = [18, 16, 8], strides = [1, 1, 1]} : vector<18x18x8xbf16> to vector<18x16x8xbf16>
    %9 = tpu.concatenate %6, %7, %8 in 2 : vector<18x16x8xbf16>, vector<18x16x8xbf16>, vector<18x16x8xbf16> -> vector<18x16x24xbf16>
    %10 = vector.extract_strided_slice %9 {offsets = [0, 0, 0], sizes = [16, 16, 24], strides = [1, 1, 1]} : vector<18x16x24xbf16> to vector<16x16x24xbf16>
    %11 = vector.extract_strided_slice %9 {offsets = [1, 0, 0], sizes = [16, 16, 24], strides = [1, 1, 1]} : vector<18x16x24xbf16> to vector<16x16x24xbf16>
    %12 = vector.extract_strided_slice %9 {offsets = [2, 0, 0], sizes = [16, 16, 24], strides = [1, 1, 1]} : vector<18x16x24xbf16> to vector<16x16x24xbf16>
    %13 = tpu.concatenate %10, %11, %12 in 2 : vector<16x16x24xbf16>, vector<16x16x24xbf16>, vector<16x16x24xbf16> -> vector<16x16x72xbf16>
    %14 = vector.shape_cast %13 : vector<16x16x72xbf16> to vector<256x72xbf16>
    %c0_4 = arith.constant 0 : index
    %c0_5 = arith.constant 0 : index
    %15 = vector.load %arg2[%c0_4, %c0_5] : memref<72x8xbf16, #tpu.memory_space<vmem>>, vector<72x8xbf16>
    %cst_6 = arith.constant dense<0.000000e+00> : vector<256x8xf32>
    %16 = tpu.matmul %14, %15, %cst_6 {dimension_numbers = #tpu.dot_dimension_numbers<[1], [0], [0], [1], [0, 0, 1, 1], [], []>} : vector<256x72xbf16>, vector<72x8xbf16>, vector<256x8xf32> -> vector<256x8xf32>
    %c0_7 = arith.constant 0 : index
    %c0_8 = arith.constant 0 : index
    %17 = vector.load %arg3[%c0_7, %c0_8] : memref<1x8xf32, #tpu.memory_space<vmem>>, vector<1x8xf32>
    %18 = vector.broadcast %17 : vector<1x8xf32> to vector<256x8xf32>
    %19 = arith.addf %16, %18 : vector<256x8xf32>
    %cst_9 = arith.constant 0.000000e+00 : f32
    %20 = vector.broadcast %cst_9 : f32 to vector<256x8xf32>
    %21 = arith.maximumf %19, %20 : vector<256x8xf32>
    %22 = vector.shape_cast %21 : vector<256x8xf32> to vector<16x16x8xf32>
    %23 = arith.truncf %22 : vector<16x16x8xf32> to vector<16x16x8xbf16>
    %cst_10 = arith.constant 0.000000e+00 : bf16
    %24 = vector.broadcast %cst_10 : bf16 to vector<1x16x8xbf16>
    %25 = tpu.concatenate %24, %23, %24 in 0 : vector<1x16x8xbf16>, vector<16x16x8xbf16>, vector<1x16x8xbf16> -> vector<18x16x8xbf16>
    %cst_11 = arith.constant 0.000000e+00 : bf16
    %26 = vector.broadcast %cst_11 : bf16 to vector<18x1x8xbf16>
    %27 = tpu.concatenate %26, %25, %26 in 1 : vector<18x1x8xbf16>, vector<18x16x8xbf16>, vector<18x1x8xbf16> -> vector<18x18x8xbf16>
    %28 = vector.extract_strided_slice %27 {offsets = [0, 0, 0], sizes = [18, 16, 8], strides = [1, 1, 1]} : vector<18x18x8xbf16> to vector<18x16x8xbf16>
    %29 = vector.extract_strided_slice %27 {offsets = [0, 1, 0], sizes = [18, 16, 8], strides = [1, 1, 1]} : vector<18x18x8xbf16> to vector<18x16x8xbf16>
    %30 = vector.extract_strided_slice %27 {offsets = [0, 2, 0], sizes = [18, 16, 8], strides = [1, 1, 1]} : vector<18x18x8xbf16> to vector<18x16x8xbf16>
    %31 = tpu.concatenate %28, %29, %30 in 2 : vector<18x16x8xbf16>, vector<18x16x8xbf16>, vector<18x16x8xbf16> -> vector<18x16x24xbf16>
    %32 = vector.extract_strided_slice %31 {offsets = [0, 0, 0], sizes = [16, 16, 24], strides = [1, 1, 1]} : vector<18x16x24xbf16> to vector<16x16x24xbf16>
    %33 = vector.extract_strided_slice %31 {offsets = [1, 0, 0], sizes = [16, 16, 24], strides = [1, 1, 1]} : vector<18x16x24xbf16> to vector<16x16x24xbf16>
    %34 = vector.extract_strided_slice %31 {offsets = [2, 0, 0], sizes = [16, 16, 24], strides = [1, 1, 1]} : vector<18x16x24xbf16> to vector<16x16x24xbf16>
    %35 = tpu.concatenate %32, %33, %34 in 2 : vector<16x16x24xbf16>, vector<16x16x24xbf16>, vector<16x16x24xbf16> -> vector<16x16x72xbf16>
    %36 = vector.shape_cast %35 : vector<16x16x72xbf16> to vector<256x72xbf16>
    %c0_12 = arith.constant 0 : index
    %c0_13 = arith.constant 0 : index
    %37 = vector.load %arg4[%c0_12, %c0_13] : memref<72x8xbf16, #tpu.memory_space<vmem>>, vector<72x8xbf16>
    %cst_14 = arith.constant dense<0.000000e+00> : vector<256x8xf32>
    %38 = tpu.matmul %36, %37, %cst_14 {dimension_numbers = #tpu.dot_dimension_numbers<[1], [0], [0], [1], [0, 0, 1, 1], [], []>} : vector<256x72xbf16>, vector<72x8xbf16>, vector<256x8xf32> -> vector<256x8xf32>
    %c0_15 = arith.constant 0 : index
    %c0_16 = arith.constant 0 : index
    %39 = vector.load %arg5[%c0_15, %c0_16] : memref<1x8xf32, #tpu.memory_space<vmem>>, vector<1x8xf32>
    %40 = vector.broadcast %39 : vector<1x8xf32> to vector<256x8xf32>
    %41 = arith.addf %38, %40 : vector<256x8xf32>
    %42 = arith.extf %1 : vector<16x16x8xbf16> to vector<16x16x8xf32>
    %43 = vector.shape_cast %42 : vector<16x16x8xf32> to vector<256x8xf32>
    %44 = arith.addf %41, %43 : vector<256x8xf32>
    %cst_17 = arith.constant 0.000000e+00 : f32
    %45 = vector.broadcast %cst_17 : f32 to vector<256x8xf32>
    %46 = arith.maximumf %44, %45 : vector<256x8xf32>
    %47 = vector.shape_cast %46 : vector<256x8xf32> to vector<16x16x8xf32>
    %c0_18 = arith.constant 0 : index
    %c0_19 = arith.constant 0 : index
    %c0_20 = arith.constant 0 : index
    %c0_21 = arith.constant 0 : index
    %48 = vector.load %arg6[%c0_18, %c0_19, %c0_20, %c0_21] : memref<1x16x16x8xf32, #tpu.memory_space<vmem>>, vector<1x16x16x8xf32>
    %49 = vector.shape_cast %48 : vector<1x16x16x8xf32> to vector<16x16x8xf32>
    %50 = vector.shape_cast %47 : vector<16x16x8xf32> to vector<1x16x16x8xf32>
    tpu.vector_store %arg6[%c0_18, %c0_19, %c0_20, %c0_21], %50 {strides = array<i32>} : memref<1x16x16x8xf32, #tpu.memory_space<vmem>>, vector<1x16x16x8xf32>,
    return
  }
  func.func @transform_0(%arg0: i32) -> (i32, i32, i32, i32) {
    %c0_i32 = arith.constant 0 : i32
    %c0_i32_0 = arith.constant 0 : i32
    %c0_i32_1 = arith.constant 0 : i32
    %c0_i32_2 = arith.constant 0 : i32
    return %arg0, %c0_i32, %c0_i32_0, %c0_i32_1 : i32, i32, i32, i32
  }
  func.func @transform_1(%arg0: i32) -> (i32, i32) {
    %c0_i32 = arith.constant 0 : i32
    %c0_i32_0 = arith.constant 0 : i32
    %c0_i32_1 = arith.constant 0 : i32
    return %c0_i32, %c0_i32_0 : i32, i32
  }
  func.func @transform_2(%arg0: i32) -> (i32, i32) {
    %c0_i32 = arith.constant 0 : i32
    %c0_i32_0 = arith.constant 0 : i32
    %c0_i32_1 = arith.constant 0 : i32
    return %c0_i32, %c0_i32_0 : i32, i32
  }
  func.func @transform_3(%arg0: i32) -> (i32, i32) {
    %c0_i32 = arith.constant 0 : i32
    %c0_i32_0 = arith.constant 0 : i32
    %c0_i32_1 = arith.constant 0 : i32
    return %c0_i32, %c0_i32_0 : i32, i32
  }
  func.func @transform_4(%arg0: i32) -> (i32, i32) {
    %c0_i32 = arith.constant 0 : i32
    %c0_i32_0 = arith.constant 0 : i32
    %c0_i32_1 = arith.constant 0 : i32
    return %c0_i32, %c0_i32_0 : i32, i32
  }
  func.func @transform_5(%arg0: i32) -> (i32, i32, i32, i32) {
    %c0_i32 = arith.constant 0 : i32
    %c0_i32_0 = arith.constant 0 : i32
    %c0_i32_1 = arith.constant 0 : i32
    %c0_i32_2 = arith.constant 0 : i32
    return %arg0, %c0_i32, %c0_i32_0, %c0_i32_1 : i32, i32, i32, i32
  }
}

</mosaic_0001>

<bundles_post_ra>
// kernel: basic_block_forward.1
= control target key start
LH: loop header
LB: loop body
LE: loop exit
PB: predicated region body
PF: predicated region fallthrough
CT: control target
= control target key end

     0   :  { %s2712_s18 = smov 0   ;;  %s3816_s0 = inlined_call_operand.vmem [shape: bf16[2,16,16,8], index: 0, kind: input, shape index: {}]   ;;  %s3817_s1 = inlined_call_operand.vmem [shape: bf16[72,8], index: 1, kind: input, shape index: {}]   ;;  %s3818_s2 = inlined_call_operand.vmem [shape: f32[1,8], index: 2, kind: input, shape index: {}]   ;;  %s3819_s3 = inlined_call_operand.vmem [shape: bf16[72,8], index: 3, kind: input, shape index: {}]   ;;  %s3820_s4 = inlined_call_operand.vmem [shape: f32[1,8], index: 4, kind: input, shape index: {}]   ;;  %s3821_s5 = inlined_call_operand.vmem [shape: f32[2,16,16,8], index: 5, kind: output, shape index: {}]  }
   0x1 LB: > { %s2478_s19 = sadd.s32 4294967295, %s2675_s18   ;;  %p2482_p0 = scmp.ge.s32.totalorder %s2675_s18, 1  ;;  %s2675_s18 = sphi %s2712_s18, %s15_s18  }
   0x2   : > { %p187_p1 = scmp.lt.s32.totalorder %s2675_s18, 3 }
   0x4   : > { %p188_p2 = pnand %p2482_p0, %p187_p1 }
   0x5   : > { %p215_p3 = scmp.lt.s32.totalorder (!%p188_p2), %s2478_s19, 1  ;;  %s2677_s24 = smov (!%p188_p2), 16  }
   0x6   : > { %191 = sbr.rel (%p188_p2) target bundleno = 1196 (0x4ac), region = 40  ;;  %s2678_s25 = smov (!%p188_p2), 8  }
   0x7   : > { %s2680_s26 = smov (!%p188_p2), 24   ;;  %s2681_s27 = smov (!%p188_p2), 48  }
   0xb   : > { %s3825_s19 = smov (!%p215_p3, %s2478_s19), 1  ;;  %vm491_vm0 = vcmask 1040384   ;;  %vm492_vm1 = vsmask.f32 256  ;;  %vm801_vm3 = vcmask 1046528   ;;  %v2679_v61 = vmov 0  }
   0xc   : > { %s2617_s20 = sshll.u32 %s3825_s19, 7  ;;  %vm2732_vm2 = vmand %vm491_vm0, %vm492_vm1  ;;  %vm528_vm4 = vsmask.f32 7424  ;;  %v341_v62 = vrot.slane %v2679_v61, 7  ;;  %vm887_vm5 = vcmask 64512   ;;  %vm922_vm6 = vcmask 130048  }
   0xd   : > { %s2726_s23 = scalar_lea.vmem %s3816_s0, %s2617_s20  ;;  %vm1177_vm7 = vcmask 1043456   ;;  %vm1038_vm8 = vcmask 195584   ;;  %vm1071_vm9 = vcmask 392192   ;;  %vm1144_vm10 = vcmask 588800   ;;  %s2618_s9 = sshll.u32 %s3825_s19, 8 }
   0xe   : > { %v2619_v0 = vld [vmem:[%s2726_s23] sm:$0xff]  ;;  %v2620_v1 = vld [vmem:[%s2726_s23 + $0x8] sm:$0xff]  ;;  %v2621_v2 = vld [vmem:[%s2726_s23 + $0x10] sm:$0xff]  ;;  %s3668_s12 = scalar_lea.vmem %s3821_s5, %s2618_s9 }
   0xf   : > { %v2622_v3 = vld [vmem:[%s2726_s23 + $0x18] sm:$0xff]  ;;  %v346_v4 = vshrl.u32 %v2619_v0, 16  ;;  %v349_v5 = vshll.u32 %v2619_v0, 16  ;;  %v353_v6 = vshrl.u32 %v2620_v1, 16  ;;  %v356_v7 = vshll.u32 %v2620_v1, 16  ;;  %v2623_v45 = vld [vmem:[%s2726_s23 + $0x20] sm:$0xff] }
  0x10   : > { %v360_v8 = vshrl.u32 %v2621_v2, 16  ;;  %v367_v9 = vshrl.u32 %v2622_v3, 16  ;;  %v363_v12 = vshll.u32 %v2621_v2, 16  ;;  %v370_v18 = vshll.u32 %v2622_v3, 16 }
  0x11   : > { %v348_v10 = vrot.slane %v346_v4, 7  ;;  %v355_v11 = vrot.slane %v353_v6, 7  ;;  %v374_v57 = vshrl.u32 %v2623_v45, 16  ;;  %v377_v2 = vshll.u32 %v2623_v45, 16 }
  0x12   : > { %v362_v14 = vrot.slane %v360_v8, 7  ;;  %v369_v22 = vrot.slane %v367_v9, 7 }
  0x13   : > { %v351_v15 = vor.u32 %v349_v5, %v348_v10  ;;  %v512_v16 = vsel %vm2732_vm2, %v348_v10, 0  ;;  %v358_v17 = vor.u32 %v356_v7, %v355_v11  ;;  %v513_v21 = vsel %vm2732_vm2, %v355_v11, 0  ;;  %v2628_v7 = vld [vmem:[%s2726_s23 + $0x48] sm:$0xff] }
  0x14   : > { %v549_v19 = vshll.u32 %v512_v16, 16  ;;  %v806_v20 = vrot.slane %v512_v16, 1  ;;  %v365_v25 = vor.u32 %v363_v12, %v362_v14  ;;  %v514_v26 = vsel %vm2732_vm2, %v362_v14, 0 }
  0x15   : > { %v2742_v23 = vsel %vm2732_vm2, 0, %v351_v15  ;;  %v2746_v24 = vsel %vm2732_vm2, 0, %v358_v17  ;;  %v561_v32 = vshll.u32 %v513_v21, 16  ;;  %v812_v36 = vrot.slane %v514_v26, 1 }
  0x16   : > { %v542_v27 = vshrl.u32 %v2742_v23, 16  ;;  %v544_v28 = vshll.u32 %v2742_v23, 16  ;;  %v805_v29 = vrot.slane %v2742_v23, 1  ;;  %v551_v30 = vrot.slane %v549_v19, 1 }
  0x17   : > { %v556_v31 = vshll.u32 %v2746_v24, 16  ;;  %v2757_v35 = vsel %vm2732_vm2, 0, %v365_v25  ;;  %v554_v37 = vshrl.u32 %v2746_v24, 16  ;;  %v809_v38 = vrot.slane %v513_v21, 1 }
  0x18   : > { %v546_v33 = vrot.slane %v544_v28, 1  ;;  %v807_v34 = vsel %vm801_vm3, %v805_v29, %v806_v20  ;;  %v811_v39 = vrot.slane %v2757_v35, 1  ;;  %v372_v40 = vor.u32 %v370_v18, %v369_v22 }
  0x19   : > { %855 = vrot.lane.b32.xlu1 %v807_v34, %s2677_s24  ;;  %v558_v42 = vrot.slane %v556_v31, 1  ;;  %v808_v43 = vrot.slane %v2746_v24, 1  ;;  %v568_v44 = vshll.u32 %v2757_v35, 16  ;;  %v566_v48 = vshrl.u32 %v2757_v35, 16 }
  0x1a   : > { %v547_v41 = vor.u32 %v546_v33, %v542_v27  ;;  %v813_v46 = vsel %vm801_vm3, %v811_v39, %v812_v36  ;;  %v2768_v47 = vsel %vm2732_vm2, 0, %v372_v40  ;;  %v563_v50 = vrot.slane %v561_v32, 1 }
  0x1b   : > { %859 = vrot.lane.b32.xlu2 %v813_v46, %s2677_s24  ;;  %v515_v51 = vsel %vm2732_vm2, %v369_v22, 0  ;;  %v580_v52 = vshll.u32 %v2768_v47, 16  ;;  %v570_v53 = vrot.slane %v568_v44, 1  ;;  %v559_v54 = vor.u32 %v558_v42, %v554_v37 }
  0x1c   : > { %v552_v49 = vsel %vm528_vm4, %v547_v41, %v551_v30  ;;  %v810_v55 = vsel %vm801_vm3, %v808_v43, %v809_v38  ;;  %v573_v56 = vshll.u32 %v514_v26, 16  ;;  %v585_v59 = vshll.u32 %v515_v51, 16 }
  0x1d   : > { %735 = vrot.lane.b32.xlu0 %v552_v49, %s2678_s25  ;;  %v571_v58 = vor.u32 %v570_v53, %v566_v48  ;;  %v578_v63 = vshrl.u32 %v2768_v47, 16  ;;  %v582_v0 = vrot.slane %v580_v52, 1  ;;  %v376_v1 = vrot.slane %v374_v57, 7 }
  0x1e   : > { %v575_v60 = vrot.slane %v573_v56, 1  ;;  %v564_v3 = vsel %vm528_vm4, %v559_v54, %v563_v50  ;;  %v814_v4 = vrot.slane %v2768_v47, 1  ;;  %v815_v5 = vrot.slane %v515_v51, 1 }
  0x1f   : > { %v583_v8 = vor.u32 %v582_v0, %v578_v63  ;;  %v587_v9 = vrot.slane %v585_v59, 1  ;;  %v2788_v10 = vsel %vm2732_vm2, 0, %v341_v62  ;;  %v379_v11 = vor.u32 %v377_v2, %v376_v1 }
  0x20   : > { %v576_v6 = vsel %vm528_vm4, %v571_v58, %v575_v60  ;;  %v816_v12 = vsel %vm801_vm3, %v814_v4, %v815_v5  ;;  %v530_v14 = vshrl.u32 %v2788_v10, 16  ;;  %v532_v15 = vshll.u32 %v2788_v10, 16  ;;  %v2624_v5 = vld [vmem:[%s2726_s23 + $0x28] sm:$0xff] }
  0x21   : > { %857 = vrot.lane.b32.xlu1 %v810_v55, %s2677_s24  ;;  %v511_v16 = vsel %vm2732_vm2, %v341_v62, 0  ;;  %v409_v17 = vshrl.u32 %v2628_v7, 16  ;;  %v588_v20 = vsel %vm528_vm4, %v583_v8, %v587_v9  ;;  %v2799_v21 = vsel %vm2732_vm2, 0, %v379_v11  ;;  %v2627_v55 = vld [vmem:[%s2726_s23 + $0x40] sm:$0xff] }
  0x22   : > { %v534_v18 = vrot.slane %v532_v15, 1  ;;  %v537_v19 = vshll.u32 %v511_v16, 16  ;;  %v516_v22 = vsel %vm2732_vm2, %v376_v1, 0  ;;  %v817_v25 = vrot.slane %v2799_v21, 1 }
  0x23   : > { %739 = vrot.lane.b32.xlu2 %v576_v6, %s2678_s25  ;;  %v818_v26 = vrot.slane %v516_v22, 1  ;;  %v411_v29 = vrot.slane %v409_v17, 7  ;;  %v412_v30 = vshll.u32 %v2628_v7, 16  ;;  %v802_v32 = vrot.slane %v2788_v10, 1  ;;  %v2629_v6 = vld [vmem:[%s2726_s23 + $0x50] sm:$0xff] }
  0x24   : > { %v535_v27 = vor.u32 %v534_v18, %v530_v14  ;;  %v539_v28 = vrot.slane %v537_v19, 1  ;;  %v803_v33 = vrot.slane %v511_v16, 1  ;;  %v592_v34 = vshll.u32 %v2799_v21, 16 }
  0x25   : > { %737 = vrot.lane.b32.xlu0 %v564_v3, %s2678_s25  ;;  %v819_v36 = vsel %vm801_vm3, %v817_v25, %v818_v26  ;;  %v414_v37 = vor.u32 %v412_v30, %v411_v29  ;;  %v590_v39 = vshrl.u32 %v2799_v21, 16  ;;  %v597_v41 = vshll.u32 %v516_v22, 16 }
  0x26   : > { %v540_v31 = vsel %vm528_vm4, %v535_v27, %v539_v28  ;;  %v804_v38 = vsel %vm801_vm3, %v802_v32, %v803_v33  ;;  %v594_v40 = vrot.slane %v592_v34, 1  ;;  %v2821_v46 = vsel %vm2732_vm2, %v411_v29, 0  ;;  %v2625_v28 = vld [vmem:[%s2726_s23 + $0x30] sm:$0xff]  ;;  %v2630_v33 = vld [vmem:[%s2726_s23 + $0x58] sm:$0xff] }
  0x27   : > { %v2815_v42 = vsel %vm2732_vm2, 0, %v414_v37  ;;  %v599_v44 = vrot.slane %v597_v41, 1  ;;  %v657_v51 = vshll.u32 %v2821_v46, 16  ;;  %v402_v56 = vshrl.u32 %v2627_v55, 16 }
  0x28   : > { %v595_v43 = vor.u32 %v594_v40, %v590_v39  ;;  %v652_v45 = vshll.u32 %v2815_v42, 16  ;;  %v650_v49 = vshrl.u32 %v2815_v42, 16  ;;  %v405_v58 = vshll.u32 %v2627_v55, 16 }
  0x29   : > { %861 = vrot.lane.b32.xlu1 %v816_v12, %s2677_s24  ;;  %v659_v53 = vrot.slane %v657_v51, 1  ;;  %v404_v57 = vrot.slane %v402_v56, 7  ;;  %v381_v7 = vshrl.u32 %v2624_v5, 16  ;;  %v416_v9 = vshrl.u32 %v2629_v6, 16 }
  0x2a   : > { %v600_v48 = vsel %vm528_vm4, %v595_v43, %v599_v44  ;;  %v654_v50 = vrot.slane %v652_v45, 1  ;;  %v384_v15 = vshll.u32 %v2624_v5, 16  ;;  %v419_v18 = vshll.u32 %v2629_v6, 16 }
  0x2b   : > { %733 = vrot.lane.b32.xlu2 %v540_v31, %s2678_s25  ;;  %v407_v59 = vor.u32 %v405_v58, %v404_v57  ;;  %v520_v62 = vsel %vm2732_vm2, %v404_v57, 0  ;;  %v383_v14 = vrot.slane %v381_v7, 7  ;;  %v418_v17 = vrot.slane %v416_v9, 7  ;;  %v2626_v9 = vld [vmem:[%s2726_s23 + $0x38] sm:$0xff] }
  0x2c   : > { %v655_v52 = vor.u32 %v654_v50, %v650_v49  ;;  %v645_v1 = vshll.u32 %v520_v62, 16  ;;  %v830_v22 = vrot.slane %v520_v62, 1  ;;  %v388_v41 = vshrl.u32 %v2625_v28, 16 }
  0x2d   : > { %741 = vrot.lane.b32.xlu0 %v588_v20, %s2678_s25  ;;  %v2832_v60 = vsel %vm2732_vm2, 0, %v407_v59  ;;  %v386_v25 = vor.u32 %v384_v15, %v383_v14  ;;  %v421_v26 = vor.u32 %v419_v18, %v418_v17  ;;  %v517_v32 = vsel %vm2732_vm2, %v383_v14, 0 }
  0x2e   : > { %v660_v54 = vsel %vm528_vm4, %v655_v52, %v659_v53  ;;  %v640_v61 = vshll.u32 %v2832_v60, 16  ;;  %v638_v63 = vshrl.u32 %v2832_v60, 16  ;;  %v647_v3 = vrot.slane %v645_v1, 1 }
  0x2f   : > { %v829_v20 = vrot.slane %v2832_v60, 1  ;;  %v2854_v31 = vsel %vm2732_vm2, 0, %v386_v25  ;;  %v821_v40 = vrot.slane %v517_v32, 1  ;;  %v423_v44 = vshrl.u32 %v2630_v33, 16 }
  0x30   : > { %v642_v0 = vrot.slane %v640_v61, 1  ;;  %v820_v39 = vrot.slane %v2854_v31, 1  ;;  %v832_v45 = vrot.slane %v2815_v42, 1  ;;  %v390_v52 = vrot.slane %v388_v41, 7 }
  0x31   : > { %863 = vrot.lane.b32.xlu1 %v819_v36, %s2677_s24  ;;  %v2863_v36 = vsel %vm2732_vm2, 0, %v421_v26  ;;  %v391_v53 = vshll.u32 %v2625_v28, 16  ;;  %v425_v56 = vrot.slane %v423_v44, 7  ;;  %v426_v57 = vshll.u32 %v2630_v33, 16 }
  0x32   : > { %v643_v2 = vor.u32 %v642_v0, %v638_v63  ;;  %v664_v43 = vshll.u32 %v2863_v36, 16  ;;  %v822_v50 = vsel %vm801_vm3, %v820_v39, %v821_v40  ;;  %v602_v59 = vshrl.u32 %v2854_v31, 16 }
  0x33   : > { %v609_v61 = vshll.u32 %v517_v32, 16  ;;  %v393_v62 = vor.u32 %v391_v53, %v390_v52  ;;  %v428_v1 = vor.u32 %v426_v57, %v425_v56  ;;  %v518_v6 = vsel %vm2732_vm2, %v390_v52, 0 }
  0x34   : > { %v648_v4 = vsel %vm528_vm4, %v643_v2, %v647_v3  ;;  %v666_v55 = vrot.slane %v664_v43, 1  ;;  %v824_v14 = vrot.slane %v518_v6, 1  ;;  %v398_v32 = vshll.u32 %v2626_v9, 16 }
  0x35   : > { %853 = vrot.lane.b32.xlu0 %v804_v38, %s2677_s24  ;;  %751 = vrot.lane.b32.xlu2 %v648_v4, %s2678_s25  ;;  %v611_v3 = vrot.slane %v609_v61, 1  ;;  %v2895_v5 = vsel %vm2732_vm2, 0, %v393_v62 }
  0x36   : > { %v616_v26 = vshll.u32 %v2895_v5, 16  ;;  %v614_v40 = vshrl.u32 %v2895_v5, 16 }
  0x38   : > { %v618_v41 = vrot.slane %v616_v26, 1 }
  0x3d   : > { %743 = vrot.lane.b32.xlu0 %v600_v48, %s2678_s25  ;;  %v833_v48 = vrot.slane %v2821_v46, 1 }
  0x3f   : > { %v834_v58 = vsel %vm801_vm3, %v832_v45, %v833_v48 }
  0x45   : > { %753 = vrot.lane.b32.xlu0 %v660_v54, %s2678_s25  ;;  %v662_v54 = vshrl.u32 %v2863_v36, 16 }
  0x47   : > { %v667_v63 = vor.u32 %v666_v55, %v662_v54 }
  0x75   : > { %v860_v11 = vpop.permute.xlu2 %859 }
  0x7d   : > { %v740_v30 = vpop.permute.xlu2 %739 }
  0x7e   : > { %v895_v38 = vsel %vm887_vm5, %v2757_v35, %v740_v30  ;;  %v604_v35 = vshll.u32 %v2854_v31, 16 }
  0x7f   : > { %v2883_v49 = vsel %vm922_vm6, %v895_v38, %v860_v11 }
  0x80   : > { %v606_v46 = vrot.slane %v604_v35, 1 }
  0x82   : > { %v607_v2 = vor.u32 %v606_v46, %v602_v59 }
  0x84   : > { %v612_v11 = vsel %vm528_vm4, %v607_v2, %v611_v3 }
  0x8b   : > { %v856_v8 = vpop.permute.xlu1 %855 }
  0x8f   : > { %v736_v12 = vpop.permute.xlu0 %735 }
  0x90   : > { %v891_v16 = vsel %vm887_vm5, %v2742_v23, %v736_v12  ;;  %v831_v23 = vsel %vm801_vm3, %v829_v20, %v830_v22  ;;  %v823_v12 = vrot.slane %v2895_v5, 1  ;;  %v395_v20 = vshrl.u32 %v2626_v9, 16 }
  0x91   : > { %v2845_v19 = vsel %vm922_vm6, %v891_v16, %v856_v8  ;;  %v2902_v8 = vsel %vm2732_vm2, 0, %v428_v1  ;;  %v523_v16 = vsel %vm2732_vm2, %v425_v56, 0 }
  0x92   : > { %973 = vrot.lane.b32.xlu1 %v2845_v19, %s2680_s26  ;;  %v676_v15 = vshll.u32 %v2902_v8, 16  ;;  %v674_v28 = vshrl.u32 %v2902_v8, 16  ;;  %v681_v30 = vshll.u32 %v523_v16, 16  ;;  %v397_v39 = vrot.slane %v395_v20, 7 }
  0x93   : > { %v858_v27 = vpop.permute.xlu1 %857  ;;  %v838_v61 = vrot.slane %v2902_v8, 1  ;;  %v839_v62 = vrot.slane %v523_v16, 1  ;;  %v734_v16 = vpop.permute.xlu2 %733 }
  0x94   : > { %v683_v48 = vrot.slane %v681_v30, 1  ;;  %v400_v35 = vor.u32 %v398_v32, %v397_v39  ;;  %v519_v54 = vsel %vm2732_vm2, %v397_v39, 0 }
  0x95   : > { %v840_v2 = vsel %vm801_vm3, %v838_v61, %v839_v62 }
  0x96   : > { %v2938_v53 = vsel %vm2732_vm2, 0, %v400_v35  ;;  %v889_v35 = vsel %vm887_vm5, %v2788_v10, %v734_v16 }
  0x97   : > { %v738_v29 = vpop.permute.xlu0 %737  ;;  %v826_v57 = vrot.slane %v2938_v53, 1  ;;  %v626_v3 = vshrl.u32 %v2938_v53, 16 }
  0x98   : > { %v893_v34 = vsel %vm887_vm5, %v2746_v24, %v738_v29  ;;  %v522_v24 = vsel %vm2732_vm2, %v418_v17, 0  ;;  %v835_v17 = vrot.slane %v2863_v36, 1  ;;  %v1112_v29 = vld [vmem:[%s3817_s1 + $0x20] sm:$0xf] }
  0x99   : > { %v2866_v37 = vsel %vm922_vm6, %v893_v34, %v858_v27  ;;  %v669_v51 = vshll.u32 %v522_v24, 16  ;;  %v836_v18 = vrot.slane %v522_v24, 1  ;;  %v825_v27 = vsel %vm801_vm3, %v823_v12, %v824_v14  ;;  %v2637_v12 = vld [vmem:[%s3817_s1 + $0x10] sm:$0xff]  ;;  %v2636_v14 = vld [vmem:[%s3817_s1 + $0x8] sm:$0xff] }
  0x9a   : > { %871 = vrot.lane.b32.xlu1 %v831_v23, %s2677_s24  ;;  %975 = vrot.lane.b32.xlu0 %v2866_v37, %s2680_s26  ;;  %v678_v23 = vrot.slane %v676_v15, 1  ;;  %v1134_v33 = vunpack.c.l.b16 %v1112_v29  ;;  %v621_v24 = vshll.u32 %v518_v6, 16  ;;  %v633_v6 = vshll.u32 %v519_v54, 16  ;;  %v2631_v15 = vld [vmem:[%s2726_s23 + $0x60] sm:$0xff] }
  0x9b   : > { %1006 = vrot.lane.b32.xlu2 %v2866_v37, %s2681_s27  ;;  %v671_v0 = vrot.slane %v669_v51, 1  ;;  %v862_v25 = vpop.permute.xlu1 %861  ;;  %v752_v32 = vpop.permute.xlu2 %751 }
  0x9c   : > { %v1139_v43 = vpack.c.b16 %v1134_v33, %v1134_v33  ;;  %v679_v45 = vor.u32 %v678_v23, %v674_v28  ;;  %v623_v51 = vrot.slane %v621_v24, 1 }
  0x9d   : > { %v672_v7 = vsel %vm528_vm4, %v667_v63, %v671_v0  ;;  %v628_v63 = vshll.u32 %v2938_v53, 16 }
  0x9e   : > { %v1179_v44 = vsel %vm1177_vm7, %v1139_v43, 0  ;;  %v684_v52 = vsel %vm528_vm4, %v679_v45, %v683_v48  ;;  %v2632_v43 = vld [vmem:[%s2726_s23 + $0x68] sm:$0xff] }
  0x9f   : > { %v742_v4 = vpop.permute.xlu0 %741  ;;  %1184 = vmatpush.bf16.msra.mxu0 %v1179_v44  ;;  %2643 = vmatpush.bf16.msra.mxu2 %v1179_v44  ;;  %v437_v48 = vshrl.u32 %v2632_v43, 16 }
  0xa0   : > { %v897_v22 = vsel %vm887_vm5, %v2768_v47, %v742_v4  ;;  %v837_v47 = vsel %vm801_vm3, %v835_v17, %v836_v18  ;;  %v630_v4 = vrot.slane %v628_v63, 1  ;;  %v2635_v17 = vld [vmem:[%s3817_s1] sm:$0xff]  ;;  %v430_v18 = vshrl.u32 %v2631_v15, 16 }
  0xa1   : > { %v2924_v34 = vsel %vm922_vm6, %v897_v22, %v862_v25  ;;  %v433_v22 = vshll.u32 %v2631_v15, 16 }
  0xa2   : > { %1008 = vrot.lane.b32.xlu1 %v2883_v49, %s2681_s27  ;;  %865 = vrot.lane.b32.xlu0 %v822_v50, %s2677_s24  ;;  %v619_v50 = vor.u32 %v618_v41, %v614_v40  ;;  %v432_v20 = vrot.slane %v430_v18, 7 }
  0xa3   : > { %873 = vrot.lane.b32.xlu2 %v834_v58, %s2677_s24  ;;  %v827_v58 = vrot.slane %v519_v54, 1  ;;  %v864_v46 = vpop.permute.xlu1 %863 }
  0xa4   : > { %v624_v55 = vsel %vm528_vm4, %v619_v50, %v623_v51  ;;  %v435_v25 = vor.u32 %v433_v22, %v432_v20  ;;  %v524_v28 = vsel %vm2732_vm2, %v432_v20, 0 }
  0xa5   : > { %v828_v0 = vsel %vm801_vm3, %v826_v57, %v827_v58  ;;  %v693_v30 = vshll.u32 %v524_v28, 16  ;;  %v907_v57 = vsel %vm887_vm5, %v2832_v60, %v752_v32  ;;  %v842_v63 = vrot.slane %v524_v28, 1 }
  0xa6   : > { %v2979_v26 = vsel %vm2732_vm2, 0, %v435_v25 }
  0xa7   : > { %v2926_v38 = vpop.permute.xlu0 %853  ;;  %v686_v29 = vshrl.u32 %v2979_v26, 16  ;;  %v841_v62 = vrot.slane %v2979_v26, 1 }
  0xa8   : > { %v2999_v51 = vsel %vm922_vm6, %v889_v35, %v2926_v38 }
  0xaa   : > { %755 = vrot.lane.b32.xlu1 %v672_v7, %s2678_s25  ;;  %977 = vrot.lane.b32.xlu0 %v2883_v49, %s2680_s26  ;;  %v635_v7 = vrot.slane %v633_v6, 1  ;;  %v843_v6 = vsel %vm801_vm3, %v841_v62, %v842_v63 }
  0xab   : > { %745 = vrot.lane.b32.xlu2 %v612_v11, %s2678_s25  ;;  %v2638_v11 = vld [vmem:[%s3817_s1 + $0x18] sm:$0xff] }
  0xac   : > { %1185 = vmatpush.bf16.msra.mxu0 %v2638_v11  ;;  %2644 = vmatpush.bf16.msra.mxu2 %v2638_v11 }
  0xaf   : > { %v744_v56 = vpop.permute.xlu0 %743 }
  0xb0   : > { %v899_v59 = vsel %vm887_vm5, %v2799_v21, %v744_v56  ;;  %v631_v21 = vor.u32 %v630_v4, %v626_v3  ;;  %1186 = vmatpush.bf16.msra.mxu0 %v2637_v12  ;;  %2645 = vmatpush.bf16.msra.mxu2 %v2637_v12 }
  0xb1   : > { %v2954_v1 = vsel %vm922_vm6, %v899_v59, %v864_v46  ;;  %v2633_v46 = vld [vmem:[%s2726_s23 + $0x70] sm:$0xff] }
  0xb2   : > { %867 = vrot.lane.b32.xlu0 %v825_v27, %s2677_s24  ;;  %1010 = vrot.lane.b32.xlu1 %v2924_v34, %s2681_s27  ;;  %v636_v9 = vsel %vm528_vm4, %v631_v21, %v635_v7  ;;  %v688_v27 = vshll.u32 %v2979_v26, 16  ;;  %v447_v16 = vshll.u32 %v2633_v46, 16 }
  0xb3   : > { %875 = vrot.lane.b32.xlu2 %v837_v47, %s2677_s24  ;;  %v695_v47 = vrot.slane %v693_v30, 1 }
  0xb4   : > { %1187 = vmatpush.bf16.msra.mxu0 %v2636_v14  ;;  %2646 = vmatpush.bf16.msra.mxu2 %v2636_v14  ;;  %v690_v23 = vrot.slane %v688_v27, 1 }
  0xb6   : > { %v691_v33 = vor.u32 %v690_v23, %v686_v29  ;;  %v2634_v23 = vld [vmem:[%s2726_s23 + $0x78] sm:$0xff] }
  0xb7   : > { %v754_v41 = vpop.permute.xlu0 %753 }
  0xb8   : > { %1188 = vmatpush.bf16.msra.mxu0 %v2635_v17  ;;  %2647 = vmatpush.bf16.msra.mxu2 %v2635_v17  ;;  %v696_v39 = vsel %vm528_vm4, %v691_v33, %v695_v47  ;;  %v909_v24 = vsel %vm887_vm5, %v2815_v42, %v754_v41  ;;  %v439_v42 = vrot.slane %v437_v48, 7 }
  0xba   : > { %979 = vrot.lane.b32.xlu0 %v2924_v34, %s2680_s26  ;;  %757 = vrot.lane.b32.xlu1 %v684_v52, %s2678_s25  ;;  %v440_v52 = vshll.u32 %v2632_v43, 16  ;;  %v525_v60 = vsel %vm2732_vm2, %v439_v42, 0 }
  0xbb   : > { %747 = vrot.lane.b32.xlu2 %v624_v55, %s2678_s25  ;;  %v845_v47 = vrot.slane %v525_v60, 1 }
  0xbc   : > { %v442_v56 = vor.u32 %v440_v52, %v439_v42 }
  0xbe   : > { %v3011_v59 = vsel %vm2732_vm2, 0, %v442_v56 }
  0xbf   : > { %v698_v21 = vshrl.u32 %v3011_v59, 16  ;;  %v844_v33 = vrot.slane %v3011_v59, 1 }
  0xc2   : > { %869 = vrot.lane.b32.xlu0 %v828_v0, %s2677_s24  ;;  %1012 = vrot.lane.b32.xlu1 %v2954_v1, %s2681_s27  ;;  %v700_v0 = vshll.u32 %v3011_v59, 16 }
  0xc3   : > { %877 = vrot.lane.b32.xlu2 %v840_v2, %s2677_s24  ;;  %v444_v2 = vshrl.u32 %v2633_v46, 16 }
  0xc4   : > { %v702_v7 = vrot.slane %v700_v0, 1 }
  0xc5   : > { %v446_v15 = vrot.slane %v444_v2, 7 }
  0xca   : > { %759 = vrot.lane.b32.xlu0 %v696_v39, %s2678_s25 }
  0xcb   : > { %749 = vrot.lane.b32.xlu2 %v636_v9, %s2678_s25  ;;  %v705_v9 = vshll.u32 %v525_v60, 16 }
  0xcd   : > { %v707_v20 = vrot.slane %v705_v9, 1 }
  0xf5   : > { %v1007_v40 = vpop.permute.xlu2 %1006 }
  0xfd   : > { %v874_v44 = vpop.permute.xlu2 %873 }
  0xfe   : > { %v2991_v45 = vsel %vm922_vm6, %v909_v24, %v874_v44  ;;  %v846_v24 = vsel %vm801_vm3, %v844_v33, %v845_v47 }
  0xff   : > { %1022 = vrot.lane.b32.xlu2 %v2991_v45, %s2681_s27 }
 0x104   : > { %v974_v50 = vpop.permute.xlu1 %973 }
 0x105   : > { %v1040_v54 = vsel %vm1038_vm8, %v2999_v51, %v974_v50  ;;  %v746_v10 = vpop.permute.xlu2 %745 }
 0x106   : > { %v1073_v55 = vsel %vm1071_vm9, %v1040_v54, %v1007_v40  ;;  %v901_v4 = vsel %vm887_vm5, %v2854_v31, %v746_v10  ;;  %v703_v31 = vor.u32 %v702_v7, %v698_v21  ;;  %v526_v40 = vsel %vm2732_vm2, %v446_v15, 0 }
 0x107   : > { %981 = vrot.lane.b32.xlu2 %v2954_v1, %s2680_s26  ;;  %2567 = vmatmul.msk.bf16.vlgmr.msra.gmra.mxu0 %vm1144_vm10, %v1073_v55  ;;  %v717_v48 = vshll.u32 %v526_v40, 16  ;;  %v454_v54 = vshll.u32 %v2634_v23, 16 }
 0x108   : > { %v708_v22 = vsel %vm528_vm4, %v703_v31, %v707_v20 }
 0x10c   : > { %v872_v38 = vpop.permute.xlu1 %871  ;;  %v976_v58 = vpop.permute.xlu0 %975 }
 0x10d   : > { %v3015_v61 = vsel %vm922_vm6, %v907_v57, %v872_v38  ;;  %v876_v3 = vpop.permute.xlu2 %875  ;;  %v1042_v11 = vsel %vm1038_vm8, %v2845_v19, %v976_v58  ;;  %v449_v19 = vor.u32 %v447_v16, %v446_v15 }
 0x10e   : > { %989 = vrot.lane.b32.xlu1 %v3015_v61, %s2680_s26 }
 0x10f   : > { %v3040_v29 = vsel %vm2732_vm2, 0, %v449_v19 }
 0x110   : > { %v712_v39 = vshll.u32 %v3040_v29, 16  ;;  %v710_v43 = vshrl.u32 %v3040_v29, 16  ;;  %v847_v2 = vrot.slane %v3040_v29, 1 }
 0x112   : > { %v714_v44 = vrot.slane %v712_v39, 1 }
 0x114   : > { %v1009_v12 = vpop.permute.xlu1 %1008  ;;  %v866_v14 = vpop.permute.xlu0 %865 }
 0x115   : > { %v3030_v17 = vsel %vm922_vm6, %v901_v4, %v866_v14  ;;  %v1075_v18 = vsel %vm1071_vm9, %v1042_v11, %v1009_v12  ;;  %v748_v25 = vpop.permute.xlu2 %747 }
 0x116   : > { %879 = vrot.lane.b32.xlu1 %v843_v6, %s2677_s24  ;;  %1014 = vrot.lane.b32.xlu0 %v3030_v17, %s2681_s27  ;;  %v903_v41 = vsel %vm887_vm5, %v2895_v5, %v748_v25  ;;  %v719_v5 = vrot.slane %v717_v48, 1 }
 0x117   : > { %2568 = vmatmul.msk.bf16.gmra.mxu0 %vm1144_vm10, %v1075_v18 }
 0x11c   : > { %v756_v27 = vpop.permute.xlu1 %755  ;;  %v978_v28 = vpop.permute.xlu0 %977 }
 0x11d   : > { %v911_v30 = vsel %vm887_vm5, %v2863_v36, %v756_v27  ;;  %v451_v36 = vshrl.u32 %v2634_v23, 16  ;;  %v1044_v35 = vsel %vm1038_vm8, %v2866_v37, %v978_v28  ;;  %v878_v56 = vpop.permute.xlu2 %877  ;;  %v715_v37 = vor.u32 %v714_v44, %v710_v43 }
 0x11e   : > { %991 = vrot.lane.b32.xlu1 %v2991_v45, %s2680_s26  ;;  %761 = vrot.lane.b32.xlu0 %v708_v22, %s2678_s25  ;;  %v3049_v32 = vsel %vm922_vm6, %v911_v30, %v876_v3  ;;  %v848_v3 = vrot.slane %v526_v40, 1 }
 0x11f   : > { %1024 = vrot.lane.b32.xlu2 %v3049_v32, %s2681_s27  ;;  %v453_v52 = vrot.slane %v451_v36, 7  ;;  %v720_v38 = vsel %vm528_vm4, %v715_v37, %v719_v5 }
 0x120   : > { %v849_v21 = vsel %vm801_vm3, %v847_v2, %v848_v3 }
 0x121   : > { %v456_v57 = vor.u32 %v454_v54, %v453_v52 }
 0x123   : > { %v3076_v62 = vsel %vm2732_vm2, 0, %v456_v57 }
 0x124   : > { %v1011_v50 = vpop.permute.xlu1 %1010  ;;  %v868_v42 = vpop.permute.xlu0 %867  ;;  %v724_v4 = vshll.u32 %v3076_v62, 16  ;;  %v722_v7 = vshrl.u32 %v3076_v62, 16 }
 0x125   : > { %v3064_v55 = vsel %vm922_vm6, %v903_v41, %v868_v42  ;;  %v1077_v10 = vsel %vm1071_vm9, %v1044_v35, %v1011_v50  ;;  %v750_v60 = vpop.permute.xlu2 %749 }
 0x126   : > { %881 = vrot.lane.b32.xlu1 %v846_v24, %s2677_s24  ;;  %1016 = vrot.lane.b32.xlu0 %v3064_v55, %s2681_s27  ;;  %v905_v6 = vsel %vm887_vm5, %v2938_v53, %v750_v60  ;;  %v726_v9 = vrot.slane %v724_v4, 1 }
 0x127   : > { %983 = vrot.lane.b32.xlu2 %v3030_v17, %s2680_s26  ;;  %2569 = vmatmul.msk.bf16.gmra.mxu0 %vm1144_vm10, %v1077_v10 }
 0x128   : > { %v727_v53 = vor.u32 %v726_v9, %v722_v7 }
 0x12c   : > { %v758_v58 = vpop.permute.xlu1 %757  ;;  %v980_v46 = vpop.permute.xlu0 %979 }
 0x12d   : > { %v913_v63 = vsel %vm887_vm5, %v2902_v8, %v758_v58  ;;  %v527_v8 = vsel %vm2732_vm2, %v453_v52, 0  ;;  %v1046_v12 = vsel %vm1038_vm8, %v2883_v49, %v980_v46  ;;  %v850_v49 = vrot.slane %v3076_v62, 1 }
 0x12e   : > { %993 = vrot.lane.b32.xlu1 %v3049_v32, %s2680_s26  ;;  %763 = vrot.lane.b32.xlu0 %v720_v38, %s2678_s25  ;;  %v3084_v0 = vsel %vm922_vm6, %v913_v63, %v878_v56  ;;  %v729_v11 = vshll.u32 %v527_v8, 16  ;;  %v851_v19 = vrot.slane %v527_v8, 1 }
 0x12f   : > { %1026 = vrot.lane.b32.xlu2 %v3084_v0, %s2681_s27 }
 0x130   : > { %v731_v31 = vrot.slane %v729_v11, 1  ;;  %v852_v22 = vsel %vm801_vm3, %v850_v49, %v851_v19 }
 0x132   : > { %v732_v20 = vsel %vm528_vm4, %v727_v53, %v731_v31 }
 0x134   : > { %v1013_v14 = vpop.permute.xlu1 %1012  ;;  %v870_v15 = vpop.permute.xlu0 %869 }
 0x135   : > { %v940_v16 = vsel %vm922_vm6, %v905_v6, %v870_v15  ;;  %v1079_v18 = vsel %vm1071_vm9, %v1046_v12, %v1013_v14 }
 0x136   : > { %883 = vrot.lane.b32.xlu1 %v849_v21, %s2677_s24  ;;  %1018 = vrot.lane.b32.xlu0 %v940_v16, %s2681_s27 }
 0x137   : > { %985 = vrot.lane.b32.xlu2 %v3064_v55, %s2680_s26  ;;  %2570 = vmatmul.msk.bf16.gmra.mxu0 %vm1144_vm10, %v1079_v18 }
 0x13c   : > { %v760_v27 = vpop.permute.xlu0 %759 }
 0x13d   : > { %v915_v39 = vsel %vm887_vm5, %v2979_v26, %v760_v27 }
 0x13e   : > { %995 = vrot.lane.b32.xlu1 %v3084_v0, %s2680_s26  ;;  %765 = vrot.lane.b32.xlu0 %v732_v20, %s2678_s25 }
 0x146   : > { %885 = vrot.lane.b32.xlu1 %v852_v22, %s2677_s24  ;;  %1020 = vrot.lane.b32.xlu0 %v3015_v61, %s2681_s27 }
 0x159   : > { %v1023_v25 = vpop.permute.xlu2 %1022 }
 0x161   : > { %v982_v28 = vpop.permute.xlu2 %981 }
 0x162   : > { %v1048_v36 = vsel %vm1038_vm8, %v2924_v34, %v982_v28  ;;  %v3133_v34 = vld [vmem:[%s3818_s2] ss:$0 sm:$0xff] }
 0x179   : > { %v1025_v40 = vpop.permute.xlu2 %1024 }
 0x180   : > { %v990_v23 = vpop.permute.xlu1 %989 }
 0x181   : > { %v1056_v30 = vsel %vm1038_vm8, %v940_v16, %v990_v23  ;;  %v984_v50 = vpop.permute.xlu2 %983 }
 0x182   : > { %v1089_v33 = vsel %vm1071_vm9, %v1056_v30, %v1023_v25  ;;  %v1050_v57 = vsel %vm1038_vm8, %v2954_v1, %v984_v50 }
 0x183   : > { %2575 = vmatmul.msk.bf16.vlgmr.msra.gmra.mxu2 %vm1144_vm10, %v1089_v33 }
 0x184   : > { %v1190_v47 = vpop.f32.mrf.mxu0 }
 0x185   : > { %v1191_v10 = vadd.f32 %v3133_v34, %v1190_v47 }
 0x187   : > { %v1270_v38 = vmax.f32 %v1191_v10, 0.0 }
 0x188   : > { %v880_v41 = vpop.permute.xlu1 %879  ;;  %v1015_v24 = vpop.permute.xlu0 %1014 }
 0x189   : > { %v3122_v43 = vsel %vm922_vm6, %v915_v39, %v880_v41  ;;  %v1081_v44 = vsel %vm1071_vm9, %v1048_v36, %v1015_v24  ;;  %v1027_v2 = vpop.permute.xlu2 %1026 }
 0x18a   : > { %997 = vrot.lane.b32.xlu1 %v3122_v43, %s2680_s26  ;;  %1028 = vrot.lane.b32.xlu2 %v3122_v43, %s2681_s27 }
 0x18b   : > { %2571 = vmatmul.msk.bf16.gmra.mxu0 %vm1144_vm10, %v1081_v44 }
 0x18c   : > { %v1192_v26 = vpop.f32.mrf.mxu0 }
 0x18d   : > { %v1193_v52 = vadd.f32 %v3133_v34, %v1192_v26 }
 0x18f   : > { %v1271_v37 = vmax.f32 %v1193_v52, 0.0 }
 0x190   : > { %v992_v48 = vpop.permute.xlu1 %991  ;;  %v762_v35 = vpop.permute.xlu0 %761 }
 0x191   : > { %v1058_v42 = vsel %vm1038_vm8, %v3015_v61, %v992_v48  ;;  %v917_v5 = vsel %vm887_vm5, %v3011_v59, %v762_v35  ;;  %v1303_v60 = vpack.c.bf16 %v1271_v37, %v1271_v37  ;;  %v1302_v59 = vpack.c.bf16 %v1270_v38, %v1270_v38  ;;  %v986_v14 = vpop.permute.xlu2 %985 }
 0x192   : > { %987 = vrot.lane.b32.xlu2 %v940_v16, %s2680_s26  ;;  %v1091_v54 = vsel %vm1071_vm9, %v1058_v42, %v1025_v40  ;;  %v1052_v53 = vsel %vm1038_vm8, %v3030_v17, %v986_v14 }
 0x193   : > { %2576 = vmatmul.msk.bf16.gmra.mxu2 %vm1144_vm10, %v1091_v54  ;;  %v1367_v1 = vunpack.c.l.b16 %v1303_v60  ;;  %v1366_v4 = vunpack.c.l.b16 %v1302_v59 }
 0x194   : > { %v1195_v56 = vpop.f32.mrf.mxu0 }
 0x195   : > { %v1398_v7 = vpack.c.b16 %v1367_v1, %v1366_v4  ;;  %v1196_v12 = vadd.f32 %v3133_v34, %v1195_v56 }
 0x197   : > { %v1415_v15 = vshrl.u32 %v1398_v7, 16  ;;  %v1272_v31 = vmax.f32 %v1196_v12, 0.0 }
 0x198   : > { %v882_v61 = vpop.permute.xlu1 %881  ;;  %v1017_v58 = vpop.permute.xlu0 %1016 }
 0x199   : > { %v3147_v46 = vsel %vm922_vm6, %v917_v5, %v882_v61  ;;  %v1083_v63 = vsel %vm1071_vm9, %v1050_v57, %v1017_v58  ;;  %v1417_v22 = vrot.slane %v1415_v15, 7  ;;  %v1304_v17 = vpack.c.bf16 %v1272_v31, %v1272_v31 }
 0x19a   : > { %999 = vrot.lane.b32.xlu0 %v3147_v46, %s2680_s26  ;;  %1030 = vrot.lane.b32.xlu2 %v3147_v46, %s2681_s27 }
 0x19b   : > { %2572 = vmatmul.msk.bf16.gmra.mxu0 %vm1144_vm10, %v1083_v63  ;;  %v1368_v23 = vunpack.c.l.b16 %v1304_v17  ;;  %v1574_v44 = vsel %vm2732_vm2, %v1417_v22, 0 }
 0x19c   : > { %v1197_v3 = vpop.f32.mrf.mxu0  ;;  %v1598_v42 = vshll.u32 %v1574_v44, 16  ;;  %v1847_v37 = vrot.slane %v1574_v44, 1 }
 0x19d   : > { %v1198_v9 = vadd.f32 %v3133_v34, %v1197_v3 }
 0x19e   : > { %v1600_v56 = vrot.slane %v1598_v42, 1 }
 0x19f   : > { %v1273_v16 = vmax.f32 %v1198_v9, 0.0 }
 0x1a0   : > { %v994_v8 = vpop.permute.xlu1 %993  ;;  %v764_v6 = vpop.permute.xlu0 %763 }
 0x1a1   : > { %v1060_v21 = vsel %vm1038_vm8, %v2991_v45, %v994_v8  ;;  %v919_v18 = vsel %vm887_vm5, %v3040_v29, %v764_v6  ;;  %v1305_v25 = vpack.c.bf16 %v1273_v16, %v1273_v16  ;;  %v1418_v29 = vshll.u32 %v1398_v7, 16 }
 0x1a2   : > { %v1093_v11 = vsel %vm1071_vm9, %v1060_v21, %v1027_v2 }
 0x1a3   : > { %2577 = vmatmul.msk.bf16.gmra.mxu2 %vm1144_vm10, %v1093_v11  ;;  %v1420_v27 = vor.u32 %v1418_v29, %v1417_v22  ;;  %v1369_v28 = vunpack.c.l.b16 %v1305_v25 }
 0x1a4   : > { %v1200_v2 = vpop.f32.mrf.mxu0 }
 0x1a5   : > { %v3176_v33 = vsel %vm2732_vm2, 0, %v1420_v27  ;;  %v1399_v47 = vpack.c.b16 %v1369_v28, %v1368_v23  ;;  %v1201_v31 = vadd.f32 %v3133_v34, %v1200_v2 }
 0x1a6   : > { %v1593_v40 = vshll.u32 %v3176_v33, 16  ;;  %v1591_v50 = vshrl.u32 %v3176_v33, 16  ;;  %v1846_v10 = vrot.slane %v3176_v33, 1 }
 0x1a7   : > { %v1422_v36 = vshrl.u32 %v1399_v47, 16  ;;  %v1425_v52 = vshll.u32 %v1399_v47, 16  ;;  %v1274_v22 = vmax.f32 %v1201_v31, 0.0 }
 0x1a8   : > { %v884_v45 = vpop.permute.xlu1 %883  ;;  %v1019_v20 = vpop.permute.xlu0 %1018  ;;  %v1595_v48 = vrot.slane %v1593_v40, 1  ;;  %v1848_v57 = vsel %vm801_vm3, %v1846_v10, %v1847_v37 }
 0x1a9   : > { %v3166_v49 = vsel %vm922_vm6, %v919_v18, %v884_v45  ;;  %v1085_v19 = vsel %vm1071_vm9, %v1052_v53, %v1019_v20  ;;  %v1424_v35 = vrot.slane %v1422_v36, 7  ;;  %v1306_v28 = vpack.c.bf16 %v1274_v22, %v1274_v22 }
 0x1aa   : > { %1001 = vrot.lane.b32.xlu2 %v3166_v49, %s2680_s26  ;;  %1032 = vrot.lane.b32.xlu1 %v3166_v49, %s2681_s27  ;;  %v1596_v54 = vor.u32 %v1595_v48, %v1591_v50 }
 0x1ab   : > { %2573 = vmatmul.msk.bf16.gmra.mxu0 %vm1144_vm10, %v1085_v19  ;;  %v3200_v61 = vsel %vm2732_vm2, %v1424_v35, 0  ;;  %v1370_v36 = vunpack.c.l.b16 %v1306_v28 }
 0x1ac   : > { %v1601_v5 = vsel %vm528_vm4, %v1596_v54, %v1600_v56  ;;  %v1850_v63 = vrot.slane %v3200_v61, 1  ;;  %v1202_v4 = vpop.f32.mrf.mxu0 }
 0x1b0   : > { %v996_v30 = vpop.permute.xlu1 %995  ;;  %v766_v39 = vpop.permute.xlu0 %765 }
 0x1b1   : > { %v921_v41 = vsel %vm887_vm5, %v3076_v62, %v766_v39  ;;  %v1427_v62 = vor.u32 %v1425_v52, %v1424_v35  ;;  %v1062_v59 = vsel %vm1038_vm8, %v3049_v32, %v996_v30 }
 0x1b2   : > { %1036 = vrot.lane.b32.xlu2 %v2999_v51, %s2681_s27 }
 0x1b3   : > { %v3194_v38 = vsel %vm2732_vm2, 0, %v1427_v62 }
 0x1b4   : > { %v1849_v58 = vrot.slane %v3194_v38, 1  ;;  %v1205_v9 = vpop.f32.mrf.mxu0  ;;  %v1605_v52 = vshll.u32 %v3194_v38, 16 }
 0x1b6   : > { %v1851_v60 = vsel %vm801_vm3, %v1849_v58, %v1850_v63  ;;  %v1607_v2 = vrot.slane %v1605_v52, 1 }
 0x1b8   : > { %v886_v24 = vpop.permute.xlu1 %885  ;;  %v1021_v6 = vpop.permute.xlu0 %1020 }
 0x1b9   : > { %v956_v26 = vsel %vm922_vm6, %v921_v41, %v886_v24 }
 0x1ba   : > { %1003 = vrot.lane.b32.xlu1 %v956_v26, %s2680_s26  ;;  %1034 = vrot.lane.b32.xlu0 %v956_v26, %s2681_s27 }
 0x1bc   : > { %v1207_v15 = vpop.f32.mrf.mxu0 }
 0x1c2   : > { %1782 = vrot.lane.b32.xlu1 %v1601_v5, %s2678_s25  ;;  %1894 = vrot.lane.b32.xlu0 %v1848_v57, %s2677_s24  ;;  %v1208_v57 = vadd.f32 %v3133_v34, %v1207_v15 }
 0x1ca   : > { %1896 = vrot.lane.b32.xlu1 %v1851_v60, %s2677_s24 }
 0x1e4   : > { %v1029_v1 = vpop.permute.xlu2 %1028 }
 0x1e5   : > { %v1095_v3 = vsel %vm1071_vm9, %v1062_v59, %v1029_v1  ;;  %v1206_v59 = vadd.f32 %v3133_v34, %v1205_v9  ;;  %v1610_v9 = vshll.u32 %v3200_v61, 16 }
 0x1e6   : > { %2578 = vmatmul.msk.bf16.gmra.mxu2 %vm1144_vm10, %v1095_v3 }
 0x1ec   : > { %v988_v8 = vpop.permute.xlu2 %987 }
 0x1ed   : > { %v1054_v21 = vsel %vm1038_vm8, %v3064_v55, %v988_v8  ;;  %v1203_v55 = vadd.f32 %v3133_v34, %v1202_v4 }
 0x1ee   : > { %v1087_v7 = vsel %vm1071_vm9, %v1054_v21, %v1021_v6 }
 0x1ef   : > { %2574 = vmatmul.msk.bf16.gmra.mxu0 %vm1144_vm10, %v1087_v7  ;;  %v1275_v45 = vmax.f32 %v1203_v55, 0.0 }
 0x1f1   : > { %v1307_v29 = vpack.c.bf16 %v1275_v45, %v1275_v45 }
 0x1f3   : > { %v1371_v30 = vunpack.c.l.b16 %v1307_v29 }
 0x1f4   : > { %v1031_v11 = vpop.permute.xlu2 %1030 }
 0x1f5   : > { %v1400_v44 = vpack.c.b16 %v1371_v30, %v1370_v36 }
 0x1f7   : > { %v1429_v62 = vshrl.u32 %v1400_v44, 16 }
 0x1f9   : > { %v1431_v6 = vrot.slane %v1429_v62, 7 }
 0x1fc   : > { %v998_v12 = vpop.permute.xlu1 %997 }
 0x1fd   : > { %v1064_v32 = vsel %vm1038_vm8, %v3084_v0, %v998_v12  ;;  %v1277_v12 = vmax.f32 %v1208_v57, 0.0 }
 0x1fe   : > { %v1097_v14 = vsel %vm1071_vm9, %v1064_v32, %v1031_v11 }
 0x1ff   : > { %2579 = vmatmul.msk.bf16.gmra.mxu2 %vm1144_vm10, %v1097_v14  ;;  %v1309_v29 = vpack.c.bf16 %v1277_v12, %v1277_v12 }
 0x206   : > { %v1230_v16 = vpop.f32.mrf.mxu2 }
 0x207   : > { %v1231_v53 = vadd.f32 %v3133_v34, %v1230_v16  ;;  %v1432_v16 = vshll.u32 %v1400_v44, 16  ;;  %v1002_v44 = vpop.permute.xlu2 %1001 }
 0x208   : > { %v3218_v18 = vpop.f32.mrf.mxu0  ;;  %v1068_v62 = vsel %vm1038_vm8, %v3147_v46, %v1002_v44 }
 0x209   : > { %v1286_v20 = vmax.f32 %v1231_v53, 0.0  ;;  %v1276_v53 = vmax.f32 %v1206_v59, 0.0 }
 0x20b   : > { %v1318_v17 = vpack.c.bf16 %v1286_v20, %v1286_v20  ;;  %v1603_v20 = vshrl.u32 %v3194_v38, 16  ;;  %v1308_v30 = vpack.c.bf16 %v1276_v53, %v1276_v53 }
 0x20c   : > { %v1000_v26 = vpop.permute.xlu0 %999 }
 0x20d   : > { %v1382_v47 = vunpack.c.l.b16 %v1318_v17  ;;  %v1066_v54 = vsel %vm1038_vm8, %v3122_v43, %v1000_v26  ;;  %v1608_v28 = vor.u32 %v1607_v2, %v1603_v20  ;;  %v1372_v52 = vunpack.c.l.b16 %v1308_v30 }
 0x20e   : > { %v1232_v19 = vpop.f32.mrf.mxu2 }
 0x20f   : > { %v1233_v0 = vadd.f32 %v3133_v34, %v1232_v19  ;;  %v1434_v19 = vor.u32 %v1432_v16, %v1431_v6 }
 0x210   : > { %v3224_v25 = vpop.f32.mrf.mxu0 }
 0x211   : > { %v1287_v27 = vmax.f32 %v1233_v0, 0.0  ;;  %v3256_v61 = vsel %vm2732_vm2, 0, %v1434_v19 }
 0x212   : > { %v1617_v46 = vshll.u32 %v3256_v61, 16 }
 0x213   : > { %v1319_v23 = vpack.c.bf16 %v1287_v27, %v1287_v27 }
 0x215   : > { %v1383_v39 = vunpack.c.l.b16 %v1319_v23 }
 0x216   : > { %v1235_v40 = vpop.f32.mrf.mxu2 }
 0x217   : > { %v1406_v41 = vpack.c.b16 %v1383_v39, %v1382_v47  ;;  %v1236_v35 = vadd.f32 %v3133_v34, %v1235_v40  ;;  %v1612_v39 = vrot.slane %v1610_v9, 1 }
 0x218   : > { %v3226_v24 = vpop.f32.mrf.mxu0 }
 0x219   : > { %v1471_v48 = vshrl.u32 %v1406_v41, 16  ;;  %v1474_v42 = vshll.u32 %v1406_v41, 16  ;;  %v1288_v37 = vmax.f32 %v1236_v35, 0.0  ;;  %v1373_v41 = vunpack.c.l.b16 %v1309_v29 }
 0x21a   : > { %v1613_v26 = vsel %vm528_vm4, %v1608_v28, %v1612_v39  ;;  %v1619_v28 = vrot.slane %v1617_v46, 1 }
 0x21b   : > { %v1473_v50 = vrot.slane %v1471_v48, 7  ;;  %v1320_v21 = vpack.c.bf16 %v1288_v37, %v1288_v37 }
 0x21c   : > { %v1033_v10 = vpop.permute.xlu1 %1032 }
 0x21d   : > { %v1476_v56 = vor.u32 %v1474_v42, %v1473_v50  ;;  %v1099_v5 = vsel %vm1071_vm9, %v1066_v54, %v1033_v10  ;;  %v1582_v63 = vsel %vm2732_vm2, %v1473_v50, 0  ;;  %v1384_v22 = vunpack.c.l.b16 %v1320_v21 }
 0x21e   : > { %v1237_v58 = vpop.f32.mrf.mxu2  ;;  %2580 = vmatmul.msk.bf16.gmra.mxu2 %vm1144_vm10, %v1099_v5  ;;  %v1871_v4 = vrot.slane %v1582_v63, 1  ;;  %v1694_v11 = vshll.u32 %v1582_v63, 16  ;;  %v1576_v42 = vsel %vm2732_vm2, %v1431_v6, 0  ;;  %v1852_v10 = vrot.slane %v3256_v61, 1 }
 0x21f   : > { %v3239_v60 = vsel %vm2732_vm2, 0, %v1476_v56  ;;  %v1238_v43 = vadd.f32 %v3133_v34, %v1237_v58  ;;  %v1401_v5 = vpack.c.b16 %v1373_v41, %v1372_v52  ;;  %v1853_v63 = vrot.slane %v1576_v42, 1 }
 0x220   : > { %v3243_v1 = vpop.f32.mrf.mxu0  ;;  %v1870_v3 = vrot.slane %v3239_v60, 1  ;;  %v1689_v8 = vshll.u32 %v3239_v60, 16  ;;  %v1687_v14 = vshrl.u32 %v3239_v60, 16  ;;  %v1696_v45 = vrot.slane %v1694_v11, 1 }
 0x221   : > { %v1289_v7 = vmax.f32 %v1238_v43, 0.0  ;;  %v1439_v39 = vshll.u32 %v1401_v5, 16  ;;  %v1622_v41 = vshll.u32 %v1576_v42, 16 }
 0x222   : > { %v1872_v32 = vsel %vm801_vm3, %v1870_v3, %v1871_v4  ;;  %v1691_v15 = vrot.slane %v1689_v8, 1  ;;  %v1854_v8 = vsel %vm801_vm3, %v1852_v10, %v1853_v63 }
 0x223   : > { %v1321_v55 = vpack.c.bf16 %v1289_v7, %v1289_v7  ;;  %1910 = vrot.lane.b32.xlu2 %v1872_v32, %s2677_s24  ;;  %v1624_v10 = vrot.slane %v1622_v41, 1 }
 0x224   : > { %v1692_v31 = vor.u32 %v1691_v15, %v1687_v14  ;;  %v1436_v15 = vshrl.u32 %v1401_v5, 16 }
 0x225   : > { %v1385_v0 = vunpack.c.l.b16 %v1321_v55 }
 0x226   : > { %v1240_v17 = vpop.f32.mrf.mxu2  ;;  %v1697_v27 = vsel %vm528_vm4, %v1692_v31, %v1696_v45 }
 0x227   : > { %v1407_v23 = vpack.c.b16 %v1385_v0, %v1384_v22  ;;  %1798 = vrot.lane.b32.xlu0 %v1697_v27, %s2678_s25  ;;  %v1241_v36 = vadd.f32 %v3133_v34, %v1240_v17  ;;  %v1438_v17 = vrot.slane %v1436_v15, 7 }
 0x228   : > { %v1220_v47 = vpop.f32.mrf.mxu0 }
 0x229   : > { %v1478_v40 = vshrl.u32 %v1407_v23, 16  ;;  %v1481_v35 = vshll.u32 %v1407_v23, 16  ;;  %v1221_v50 = vadd.f32 %v3133_v34, %v1220_v47  ;;  %v1290_v37 = vmax.f32 %v1241_v36, 0.0 }
 0x22a   : > { %v1615_v36 = vshrl.u32 %v3256_v61, 16 }
 0x22b   : > { %v1480_v48 = vrot.slane %v1478_v40, 7  ;;  %1784 = vrot.lane.b32.xlu2 %v1613_v26, %s2678_s25  ;;  %v1282_v59 = vmax.f32 %v1221_v50, 0.0  ;;  %v1322_v11 = vpack.c.bf16 %v1290_v37, %v1290_v37 }
 0x22c   : > { %v1035_v54 = vpop.permute.xlu0 %1034  ;;  %v1004_v40 = vpop.permute.xlu1 %1003 }
 0x22d   : > { %v1483_v56 = vor.u32 %v1481_v35, %v1480_v48  ;;  %v1101_v58 = vsel %vm1071_vm9, %v1068_v62, %v1035_v54  ;;  %v1583_v43 = vsel %vm2732_vm2, %v1480_v48, 0  ;;  %v1314_v53 = vpack.c.bf16 %v1282_v59, %v1282_v59  ;;  %v3292_v62 = vpop.permute.xlu2 %1036 }
 0x22e   : > { %v1242_v57 = vpop.f32.mrf.mxu2  ;;  %2581 = vmatmul.msk.bf16.gmra.mxu2 %vm1144_vm10, %v1101_v58  ;;  %v1874_v21 = vrot.slane %v1583_v43, 1  ;;  %v1706_v14 = vshll.u32 %v1583_v43, 16  ;;  %v1386_v22 = vunpack.c.l.b16 %v1322_v11  ;;  %v1441_v48 = vor.u32 %v1439_v39, %v1438_v17 }
 0x22f   : > { %v3272_v2 = vsel %vm2732_vm2, 0, %v1483_v56  ;;  %v1243_v3 = vadd.f32 %v3133_v34, %v1242_v57  ;;  %v1378_v23 = vunpack.c.l.b16 %v1314_v53  ;;  %v1620_v35 = vor.u32 %v1619_v28, %v1615_v36 }
 0x230   : > { %v1222_v4 = vpop.f32.mrf.mxu0  ;;  %v1873_v6 = vrot.slane %v3272_v2, 1  ;;  %v1701_v7 = vshll.u32 %v3272_v2, 16  ;;  %v1699_v55 = vshrl.u32 %v3272_v2, 16  ;;  %v1708_v19 = vrot.slane %v1706_v14, 1 }
 0x231   : > { %v1291_v12 = vmax.f32 %v1243_v3, 0.0  ;;  %v1223_v32 = vadd.f32 %v3133_v34, %v1222_v4  ;;  %v1070_v50 = vsel %vm1038_vm8, %v3166_v49, %v1004_v40  ;;  %v3298_v42 = vsel %vm2732_vm2, 0, %v1441_v48 }
 0x232   : > { %v1875_v16 = vsel %vm801_vm3, %v1873_v6, %v1874_v21  ;;  %v1703_v9 = vrot.slane %v1701_v7, 1  ;;  %v1103_v5 = vsel %vm1071_vm9, %v1070_v50, %v3292_v62  ;;  %v1625_v57 = vsel %vm528_vm4, %v1620_v35, %v1624_v10 }
 0x233   : > { %v1323_v31 = vpack.c.bf16 %v1291_v12, %v1291_v12  ;;  %v1283_v45 = vmax.f32 %v1223_v32, 0.0  ;;  %1898 = vrot.lane.b32.xlu2 %v1854_v8, %s2677_s24  ;;  %1912 = vrot.lane.b32.xlu0 %v1875_v16, %s2677_s24  ;;  %v1577_v3 = vsel %vm2732_vm2, %v1438_v17, 0  ;;  %v1855_v46 = vrot.slane %v3298_v42, 1 }
 0x234   : > { %v1704_v20 = vor.u32 %v1703_v9, %v1699_v55  ;;  %v1629_v21 = vshll.u32 %v3298_v42, 16  ;;  %v1856_v12 = vrot.slane %v1577_v3, 1  ;;  %v1627_v16 = vshrl.u32 %v3298_v42, 16 }
 0x235   : > { %v1387_v0 = vunpack.c.l.b16 %v1323_v31  ;;  %v1315_v29 = vpack.c.bf16 %v1283_v45, %v1283_v45  ;;  %v1634_v55 = vshll.u32 %v1577_v3, 16  ;;  %v1213_v45 = vadd.f32 %v3133_v34, %v3224_v25 }
 0x236   : > { %v1709_v27 = vsel %vm528_vm4, %v1704_v20, %v1708_v19  ;;  %v1857_v14 = vsel %vm801_vm3, %v1855_v46, %v1856_v12  ;;  %v1631_v15 = vrot.slane %v1629_v21, 1  ;;  %v1211_v20 = vadd.f32 %v3133_v34, %v3218_v18 }
 0x237   : > { %v1408_v30 = vpack.c.b16 %v1387_v0, %v1386_v22  ;;  %v1379_v47 = vunpack.c.l.b16 %v1315_v29  ;;  %1800 = vrot.lane.b32.xlu1 %v1709_v27, %s2678_s25  ;;  %v1636_v53 = vrot.slane %v1634_v55, 1  ;;  %v1279_v19 = vmax.f32 %v1213_v45, 0.0 }
 0x238   : > { %v1632_v9 = vor.u32 %v1631_v15, %v1627_v16  ;;  %v1278_v22 = vmax.f32 %v1211_v20, 0.0 }
 0x239   : > { %v1485_v44 = vshrl.u32 %v1408_v30, 16  ;;  %v3288_v26 = vpack.c.b16 %v1379_v47, %v1378_v23  ;;  %v1488_v54 = vshll.u32 %v1408_v30, 16  ;;  %v1311_v29 = vpack.c.bf16 %v1279_v19, %v1279_v19 }
 0x23a   : > { %v1637_v31 = vsel %vm528_vm4, %v1632_v9, %v1636_v53  ;;  %v1310_v28 = vpack.c.bf16 %v1278_v22, %v1278_v22 }
 0x23b   : > { %v1487_v52 = vrot.slane %v1485_v44, 7  ;;  %v1375_v23 = vunpack.c.l.b16 %v1311_v29  ;;  %v1218_v29 = vadd.f32 %v3133_v34, %v3243_v1 }
 0x23c   : > { %v1374_v39 = vunpack.c.l.b16 %v1310_v28 }
 0x23d   : > { %v1490_v56 = vor.u32 %v1488_v54, %v1487_v52  ;;  %v1584_v37 = vsel %vm2732_vm2, %v1487_v52, 0 }
 0x23e   : > { %2582 = vmatmul.msk.bf16.gmra.mxu2 %vm1144_vm10, %v1103_v5  ;;  %v1877_v63 = vrot.slane %v1584_v37, 1  ;;  %v1718_v59 = vshll.u32 %v1584_v37, 16  ;;  %v1402_v25 = vpack.c.b16 %v1375_v23, %v1374_v39 }
 0x23f   : > { %v3305_v49 = vsel %vm2732_vm2, 0, %v1490_v56  ;;  %1786 = vrot.lane.b32.xlu1 %v1625_v57, %s2678_s25 }
 0x240   : > { %v1876_v58 = vrot.slane %v3305_v49, 1  ;;  %v1713_v43 = vshll.u32 %v3305_v49, 16  ;;  %v1711_v8 = vshrl.u32 %v3305_v49, 16  ;;  %v1720_v11 = vrot.slane %v1718_v59, 1 }
 0x241   : > { %v1443_v52 = vshrl.u32 %v1402_v25, 16  ;;  %v1446_v3 = vshll.u32 %v1402_v25, 16 }
 0x242   : > { %v1878_v4 = vsel %vm801_vm3, %v1876_v58, %v1877_v63  ;;  %v1715_v6 = vrot.slane %v1713_v43, 1 }
 0x243   : > { %1914 = vrot.lane.b32.xlu0 %v1878_v4, %s2677_s24  ;;  %v1445_v58 = vrot.slane %v1443_v52, 7 }
 0x244   : > { %v1716_v7 = vor.u32 %v1715_v6, %v1711_v8 }
 0x245   : > { %v1448_v6 = vor.u32 %v1446_v3, %v1445_v58  ;;  %v1578_v23 = vsel %vm2732_vm2, %v1445_v58, 0 }
 0x246   : > { %v1721_v32 = vsel %vm528_vm4, %v1716_v7, %v1720_v11 }
 0x247   : > { %1802 = vrot.lane.b32.xlu2 %v1721_v32, %s2678_s25  ;;  %1900 = vrot.lane.b32.xlu1 %v1857_v14, %s2677_s24  ;;  %v3341_v14 = vsel %vm2732_vm2, 0, %v1448_v6  ;;  %v3372_v6 = vpop.permute.xlu0 %1894 }
 0x248   : > { %v1858_v39 = vrot.slane %v3341_v14, 1 }
 0x24f   : > { %1788 = vrot.lane.b32.xlu2 %v1637_v31, %s2678_s25 }
 0x269   : > { %v1245_v0 = vpop.f32.mrf.mxu2 }
 0x26a   : > { %v1246_v17 = vadd.f32 %v3133_v34, %v1245_v0  ;;  %v1641_v0 = vshll.u32 %v3341_v14, 16 }
 0x26c   : > { %v1225_v27 = vpop.f32.mrf.mxu0  ;;  %v1292_v47 = vmax.f32 %v1246_v17, 0.0  ;;  %v1643_v25 = vrot.slane %v1641_v0, 1 }
 0x26d   : > { %v1226_v30 = vadd.f32 %v3133_v34, %v1225_v27 }
 0x26e   : > { %v1324_v44 = vpack.c.bf16 %v1292_v47, %v1292_v47 }
 0x26f   : > { %v1284_v41 = vmax.f32 %v1226_v30, 0.0  ;;  %v1216_v30 = vadd.f32 %v3133_v34, %v3226_v24  ;;  %v1646_v24 = vshll.u32 %v1578_v23, 16 }
 0x270   : > { %v1388_v56 = vunpack.c.l.b16 %v1324_v44 }
 0x271   : > { %v1247_v40 = vpop.f32.mrf.mxu2  ;;  %v1316_v54 = vpack.c.bf16 %v1284_v41, %v1284_v41  ;;  %v1281_v41 = vmax.f32 %v1218_v29, 0.0 }
 0x272   : > { %v1248_v36 = vadd.f32 %v3133_v34, %v1247_v40 }
 0x273   : > { %v1380_v63 = vunpack.c.l.b16 %v1316_v54 }
 0x274   : > { %v1293_v18 = vmax.f32 %v1248_v36, 0.0  ;;  %v1227_v48 = vpop.f32.mrf.mxu0 }
 0x275   : > { %v1228_v35 = vadd.f32 %v3133_v34, %v1227_v48  ;;  %v1639_v48 = vshrl.u32 %v3341_v14, 16 }
 0x276   : > { %v1325_v50 = vpack.c.bf16 %v1293_v18, %v1293_v18  ;;  %v1859_v18 = vrot.slane %v1578_v23, 1 }
 0x277   : > { %v1285_v10 = vmax.f32 %v1228_v35, 0.0  ;;  %v1280_v35 = vmax.f32 %v1216_v30, 0.0 }
 0x278   : > { %v1389_v37 = vunpack.c.l.b16 %v1325_v50  ;;  %v1860_v54 = vsel %vm801_vm3, %v1858_v39, %v1859_v18 }
 0x279   : > { %v1317_v5 = vpack.c.bf16 %v1285_v10, %v1285_v10  ;;  %v1644_v10 = vor.u32 %v1643_v25, %v1639_v48  ;;  %v1312_v58 = vpack.c.bf16 %v1280_v35, %v1280_v35 }
 0x27a   : > { %v1409_v57 = vpack.c.b16 %v1389_v37, %v1388_v56  ;;  %v1313_v37 = vpack.c.bf16 %v1281_v41, %v1281_v41 }
 0x27b   : > { %v1381_v43 = vunpack.c.l.b16 %v1317_v5 }
 0x27c   : > { %v1492_v59 = vshrl.u32 %v1409_v57, 16  ;;  %v1495_v8 = vshll.u32 %v1409_v57, 16  ;;  %v1648_v57 = vrot.slane %v1646_v24, 1 }
 0x27d   : > { %v1405_v46 = vpack.c.b16 %v1381_v43, %v1380_v63 }
 0x27e   : > { %v1494_v4 = vrot.slane %v1492_v59, 7  ;;  %v1649_v3 = vsel %vm528_vm4, %v1644_v10, %v1648_v57 }
 0x27f   : > { %v1464_v21 = vshrl.u32 %v1405_v46, 16  ;;  %v1467_v31 = vshll.u32 %v1405_v46, 16 }
 0x280   : > { %v1497_v7 = vor.u32 %v1495_v8, %v1494_v4  ;;  %v1585_v11 = vsel %vm2732_vm2, %v1494_v4, 0  ;;  %v1377_v4 = vunpack.c.l.b16 %v1313_v37 }
 0x281   : > { %v1466_v15 = vrot.slane %v1464_v21, 7  ;;  %v1880_v55 = vrot.slane %v1585_v11, 1  ;;  %v1730_v53 = vshll.u32 %v1585_v11, 16  ;;  %v1376_v11 = vunpack.c.l.b16 %v1312_v58 }
 0x282   : > { %v3337_v12 = vsel %vm2732_vm2, 0, %v1497_v7  ;;  %v1250_v32 = vpop.f32.mrf.mxu2 }
 0x283   : > { %v1879_v16 = vrot.slane %v3337_v12, 1  ;;  %v1725_v9 = vshll.u32 %v3337_v12, 16  ;;  %v1251_v45 = vadd.f32 %v3133_v34, %v1250_v32  ;;  %v1723_v19 = vshrl.u32 %v3337_v12, 16 }
 0x284   : > { %v1469_v17 = vor.u32 %v1467_v31, %v1466_v15  ;;  %v1732_v28 = vrot.slane %v1730_v53, 1  ;;  %v1581_v59 = vsel %vm2732_vm2, %v1466_v15, 0 }
 0x285   : > { %v1881_v20 = vsel %vm801_vm3, %v1879_v16, %v1880_v55  ;;  %v1727_v22 = vrot.slane %v1725_v9, 1  ;;  %v1294_v47 = vmax.f32 %v1251_v45, 0.0  ;;  %v1682_v7 = vshll.u32 %v1581_v59, 16  ;;  %v1783_v9 = vpop.permute.xlu1 %1782 }
 0x286   : > { %1916 = vrot.lane.b32.xlu1 %v1881_v20, %s2677_s24  ;;  %v3360_v1 = vsel %vm2732_vm2, 0, %v1469_v17  ;;  %v1403_v55 = vpack.c.b16 %v1377_v4, %v1376_v11  ;;  %v1868_v10 = vrot.slane %v1581_v59, 1 }
 0x287   : > { %v1728_v27 = vor.u32 %v1727_v22, %v1723_v19  ;;  %v1326_v50 = vpack.c.bf16 %v1294_v47, %v1294_v47  ;;  %v1677_v56 = vshll.u32 %v3360_v1, 16  ;;  %v1675_v21 = vshrl.u32 %v3360_v1, 16  ;;  %v1911_v19 = vpop.permute.xlu2 %1910 }
 0x288   : > { %v1684_v15 = vrot.slane %v1682_v7, 1  ;;  %v1450_v0 = vshrl.u32 %v1403_v55, 16  ;;  %v1453_v18 = vshll.u32 %v1403_v55, 16 }
 0x289   : > { %v1733_v36 = vsel %vm528_vm4, %v1728_v27, %v1732_v28  ;;  %v1390_v63 = vunpack.c.l.b16 %v1326_v50  ;;  %v1679_v46 = vrot.slane %v1677_v56, 1 }
 0x28a   : > { %v1252_v40 = vpop.f32.mrf.mxu2  ;;  %1804 = vrot.lane.b32.xlu0 %v1733_v36, %s2678_s25  ;;  %v1452_v36 = vrot.slane %v1450_v0, 7 }
 0x28b   : > { %v1253_v44 = vadd.f32 %v3133_v34, %v1252_v40  ;;  %v1680_v16 = vor.u32 %v1679_v46, %v1675_v21 }
 0x28c   : > { %v3425_v11 = vsel %vm2732_vm2, %v1452_v36, 0 }
 0x28d   : > { %v1295_v52 = vmax.f32 %v1253_v44, 0.0  ;;  %v1685_v22 = vsel %vm528_vm4, %v1680_v16, %v1684_v15  ;;  %v1897_v48 = vpop.permute.xlu1 %1896 }
 0x28e   : > { %1902 = vrot.lane.b32.xlu1 %v1860_v54, %s2677_s24  ;;  %v1455_v54 = vor.u32 %v1453_v18, %v1452_v36 }
 0x28f   : > { %v1327_v5 = vpack.c.bf16 %v1295_v52, %v1295_v52  ;;  %v1867_v52 = vrot.slane %v3360_v1, 1 }
 0x291   : > { %v1391_v43 = vunpack.c.l.b16 %v1327_v5  ;;  %v1869_v37 = vsel %vm801_vm3, %v1867_v52, %v1868_v10  ;;  %v3402_v5 = vsel %vm2732_vm2, 0, %v1455_v54 }
 0x292   : > { %1790 = vrot.lane.b32.xlu0 %v1649_v3, %s2678_s25  ;;  %v1653_v4 = vshll.u32 %v3402_v5, 16  ;;  %v1651_v55 = vshrl.u32 %v3402_v5, 16 }
 0x293   : > { %v1410_v8 = vpack.c.b16 %v1391_v43, %v1390_v63 }
 0x295   : > { %v1499_v32 = vshrl.u32 %v1410_v8, 16  ;;  %v1502_v31 = vshll.u32 %v1410_v8, 16  ;;  %v1927_v8 = vsel %vm887_vm5, %v3176_v33, %v1783_v9  ;;  %v1658_v9 = vshll.u32 %v3425_v11, 16 }
 0x296   : > { %v3429_v33 = vsel %vm922_vm6, %v1927_v8, %v3372_v6 }
 0x297   : > { %v1501_v53 = vrot.slane %v1499_v32, 7  ;;  %v1655_v32 = vrot.slane %v1653_v4, 1 }
 0x299   : > { %v1504_v45 = vor.u32 %v1502_v31, %v1501_v53  ;;  %v1586_v20 = vsel %vm2732_vm2, %v1501_v53, 0  ;;  %v1799_v17 = vpop.permute.xlu0 %1798 }
 0x29a   : > { %1796 = vrot.lane.b32.xlu0 %v1685_v22, %s2678_s25  ;;  %v1883_v28 = vrot.slane %v1586_v20, 1  ;;  %v1742_v30 = vshll.u32 %v1586_v20, 16  ;;  %v1943_v25 = vsel %vm887_vm5, %v3239_v60, %v1799_v17  ;;  %v1785_v60 = vpop.permute.xlu2 %1784 }
 0x29b   : > { %v3380_v29 = vsel %vm2732_vm2, 0, %v1504_v45  ;;  %v3391_v35 = vsel %vm922_vm6, %v1943_v25, %v1911_v19  ;;  %v1929_v57 = vsel %vm887_vm5, %v3194_v38, %v1785_v60  ;;  %v1656_v45 = vor.u32 %v1655_v32, %v1651_v55 }
 0x29c   : > { %v1882_v27 = vrot.slane %v3380_v29, 1  ;;  %v1737_v23 = vshll.u32 %v3380_v29, 16  ;;  %v1735_v39 = vshrl.u32 %v3380_v29, 16  ;;  %v1744_v44 = vrot.slane %v1742_v30, 1 }
 0x29d   : > { %v3410_v46 = vsel %vm922_vm6, %v1929_v57, %v1897_v48  ;;  %v1660_v19 = vrot.slane %v1658_v9, 1 }
 0x29e   : > { %v1884_v47 = vsel %vm801_vm3, %v1882_v27, %v1883_v28  ;;  %v1739_v40 = vrot.slane %v1737_v23, 1 }
 0x29f   : > { %1918 = vrot.lane.b32.xlu2 %v1884_v47, %s2677_s24  ;;  %v1661_v0 = vsel %vm528_vm4, %v1656_v45, %v1660_v19 }
 0x2a0   : > { %v1740_v41 = vor.u32 %v1739_v40, %v1735_v39  ;;  %v1457_v40 = vshrl.u32 %v3288_v26, 16 }
 0x2a1   : > { %v1255_v24 = vpop.f32.mrf.mxu2 }
 0x2a2   : > { %v1745_v50 = vsel %vm528_vm4, %v1740_v41, %v1744_v44  ;;  %2022 = vrot.lane.b32.xlu0 %v3391_v35, %s2680_s26  ;;  %v1256_v56 = vadd.f32 %v3133_v34, %v1255_v24  ;;  %v1899_v28 = vpop.permute.xlu2 %1898  ;;  %v1459_v10 = vrot.slane %v1457_v40, 7 }
 0x2a3   : > { %1806 = vrot.lane.b32.xlu1 %v1745_v50, %s2678_s25 }
 0x2a4   : > { %v1296_v58 = vmax.f32 %v1256_v56, 0.0 }
 0x2a5   : > { %v1913_v43 = vpop.permute.xlu0 %1912 }
 0x2a7   : > { %1908 = vrot.lane.b32.xlu2 %v1869_v37, %s2677_s24 }
 0x2a9   : > { %v1801_v63 = vpop.permute.xlu1 %1800  ;;  %v1257_v59 = vpop.f32.mrf.mxu2 }
 0x2aa   : > { %v1945_v3 = vsel %vm887_vm5, %v3272_v2, %v1801_v63  ;;  %v1258_v21 = vadd.f32 %v3133_v34, %v1257_v59  ;;  %2038 = vrot.lane.b32.xlu0 %v3410_v46, %s2681_s27  ;;  %v1328_v2 = vpack.c.bf16 %v1296_v58, %v1296_v58  ;;  %v1460_v63 = vshll.u32 %v3288_v26, 16 }
 0x2ab   : > { %v3419_v38 = vsel %vm922_vm6, %v1945_v3, %v1913_v43 }
 0x2ac   : > { %2054 = vrot.lane.b32.xlu1 %v3419_v38, %s2681_s27  ;;  %v1297_v7 = vmax.f32 %v1258_v21, 0.0  ;;  %v1392_v53 = vunpack.c.l.b16 %v1328_v2  ;;  %v1462_v4 = vor.u32 %v1460_v63, %v1459_v10  ;;  %v2642_v63 = vld [vmem:[%s3819_s3 + $0x18] sm:$0xff] }
 0x2ae   : > { %v1329_v16 = vpack.c.bf16 %v1297_v7, %v1297_v7  ;;  %v3470_v55 = vsel %vm2732_vm2, 0, %v1462_v4 }
 0x2af   : > { %2006 = vrot.lane.b32.xlu2 %v3429_v33, %s2680_s26  ;;  %v1663_v40 = vshrl.u32 %v3470_v55, 16 }
 0x2b0   : > { %v1393_v31 = vunpack.c.l.b16 %v1329_v16 }
 0x2b1   : > { %v1260_v15 = vpop.f32.mrf.mxu2  ;;  %v1787_v37 = vpop.permute.xlu1 %1786 }
 0x2b2   : > { %v1411_v20 = vpack.c.b16 %v1393_v31, %v1392_v53  ;;  %v1261_v22 = vadd.f32 %v3133_v34, %v1260_v15  ;;  %v1931_v8 = vsel %vm887_vm5, %v3256_v61, %v1787_v37  ;;  %v1665_v15 = vshll.u32 %v3470_v55, 16 }
 0x2b3   : > { %v3466_v26 = vsel %vm922_vm6, %v1931_v8, %v1899_v28 }
 0x2b4   : > { %2008 = vrot.lane.b32.xlu1 %v3410_v46, %s2680_s26  ;;  %v1506_v6 = vshrl.u32 %v1411_v20, 16  ;;  %v1509_v27 = vshll.u32 %v1411_v20, 16  ;;  %v1298_v30 = vmax.f32 %v1261_v22, 0.0 }
 0x2b5   : > { %v1915_v21 = vpop.permute.xlu0 %1914 }
 0x2b6   : > { %v1508_v17 = vrot.slane %v1506_v6, 7  ;;  %v1330_v24 = vpack.c.bf16 %v1298_v30, %v1298_v30  ;;  %v1667_v30 = vrot.slane %v1665_v15, 1 }
 0x2b7   : > { %1792 = vrot.lane.b32.xlu2 %v1661_v0, %s2678_s25  ;;  %v1861_v0 = vrot.slane %v3402_v5, 1 }
 0x2b8   : > { %v1511_v23 = vor.u32 %v1509_v27, %v1508_v17  ;;  %v1587_v47 = vsel %vm2732_vm2, %v1508_v17, 0  ;;  %v1394_v43 = vunpack.c.l.b16 %v1330_v24  ;;  %v3491_v17 = vsel %vm2732_vm2, %v1459_v10, 0 }
 0x2b9   : > { %v1262_v39 = vpop.f32.mrf.mxu2  ;;  %v1886_v44 = vrot.slane %v1587_v47, 1  ;;  %v1754_v48 = vshll.u32 %v1587_v47, 16  ;;  %v1901_v45 = vpop.permute.xlu1 %1900  ;;  %v1862_v47 = vrot.slane %v3425_v11, 1 }
 0x2ba   : > { %v3445_v36 = vsel %vm2732_vm2, 0, %v1511_v23  ;;  %v1263_v25 = vadd.f32 %v3133_v34, %v1262_v39  ;;  %v1803_v34 = vpop.permute.xlu2 %1802 }
 0x2bb   : > { %v1885_v41 = vrot.slane %v3445_v36, 1  ;;  %v1749_v18 = vshll.u32 %v3445_v36, 16  ;;  %v1747_v54 = vshrl.u32 %v3445_v36, 16  ;;  %v1756_v58 = vrot.slane %v1754_v48, 1 }
 0x2bc   : > { %v1299_v50 = vmax.f32 %v1263_v25, 0.0  ;;  %v1947_v7 = vsel %vm887_vm5, %v3305_v49, %v1803_v34  ;;  %v1670_v25 = vshll.u32 %v3491_v17, 16 }
 0x2bd   : > { %v1887_v52 = vsel %vm801_vm3, %v1885_v41, %v1886_v44  ;;  %v1751_v60 = vrot.slane %v1749_v18, 1  ;;  %v3463_v16 = vsel %vm922_vm6, %v1947_v7, %v1915_v21  ;;  %v1863_v44 = vsel %vm801_vm3, %v1861_v0, %v1862_v47  ;;  %v2640_v21 = vld [vmem:[%s3819_s3 + $0x8] sm:$0xff] }
 0x2be   : > { %v1331_v56 = vpack.c.bf16 %v1299_v50, %v1299_v50  ;;  %1920 = vrot.lane.b32.xlu1 %v1887_v52, %s2677_s24  ;;  %v1668_v18 = vor.u32 %v1667_v30, %v1663_v40  ;;  %v1672_v48 = vrot.slane %v1670_v25, 1 }
 0x2bf   : > { %2024 = vrot.lane.b32.xlu2 %v3419_v38, %s2680_s26  ;;  %v1752_v57 = vor.u32 %v1751_v60, %v1747_v54  ;;  %v2139_v60 = vld [vmem:[%s3819_s3 + $0x20] sm:$0xf] }
 0x2c0   : > { %v1395_v3 = vunpack.c.l.b16 %v1331_v56  ;;  %v1673_v24 = vsel %vm528_vm4, %v1668_v18, %v1672_v48  ;;  %v2161_v10 = vunpack.c.l.b16 %v2139_v60 }
 0x2c1   : > { %v1757_v59 = vsel %vm528_vm4, %v1752_v57, %v1756_v58  ;;  %v1265_v54 = vpop.f32.mrf.mxu2  ;;  %v2668_v57 = vld [vmem:[%s3818_s2] ss:$0 sm:$0xff] }
 0x2c2   : > { %v1412_v2 = vpack.c.b16 %v1395_v3, %v1394_v43  ;;  %1808 = vrot.lane.b32.xlu0 %v1757_v59, %s2678_s25  ;;  %v1789_v31 = vpop.permute.xlu2 %1788  ;;  %v2166_v34 = vpack.c.b16 %v2161_v10, %v2161_v10  ;;  %v1266_v43 = vadd.f32 %v2668_v57, %v1265_v54  ;;  %v2641_v59 = vld [vmem:[%s3819_s3 + $0x10] sm:$0xff] }
 0x2c3   : > { %v1933_v22 = vsel %vm887_vm5, %v3298_v42, %v1789_v31 }
 0x2c4   : > { %v1513_v32 = vshrl.u32 %v1412_v2, 16  ;;  %v1516_v61 = vshll.u32 %v1412_v2, 16  ;;  %v3494_v27 = vsel %vm922_vm6, %v1933_v22, %v1901_v45  ;;  %v2204_v37 = vsel %vm1177_vm7, %v2166_v34, 0 }
 0x2c5   : > { %2209 = vmatpush.bf16.msra.mxu1 %v2204_v37  ;;  %2648 = vmatpush.bf16.msra.mxu3 %v2204_v37  ;;  %v1300_v4 = vmax.f32 %v1266_v43, 0.0 }
 0x2c6   : > { %v1515_v9 = vrot.slane %v1513_v32, 7  ;;  %2026 = vrot.lane.b32.xlu1 %v3463_v16, %s2680_s26 }
 0x2c7   : > { %2040 = vrot.lane.b32.xlu2 %v3466_v26, %s2681_s27  ;;  %v1332_v2 = vpack.c.bf16 %v1300_v4, %v1300_v4 }
 0x2c8   : > { %v1518_v49 = vor.u32 %v1516_v61, %v1515_v9  ;;  %v1588_v53 = vsel %vm2732_vm2, %v1515_v9, 0 }
 0x2c9   : > { %v1766_v6 = vshll.u32 %v1588_v53, 16  ;;  %v1889_v50 = vrot.slane %v1588_v53, 1  ;;  %v1267_v56 = vpop.f32.mrf.mxu2  ;;  %2210 = vmatpush.bf16.msra.mxu1 %v2642_v63  ;;  %2649 = vmatpush.bf16.msra.mxu3 %v2642_v63  ;;  %v1396_v53 = vunpack.c.l.b16 %v1332_v2 }
 0x2ca   : > { %v3481_v20 = vsel %vm2732_vm2, 0, %v1518_v49  ;;  %2056 = vrot.lane.b32.xlu0 %v3463_v16, %s2681_s27  ;;  %v1268_v58 = vadd.f32 %v2668_v57, %v1267_v56  ;;  %v2639_v49 = vld [vmem:[%s3819_s3] sm:$0xff] }
 0x2cb   : > { %v1761_v19 = vshll.u32 %v3481_v20, 16  ;;  %v1759_v28 = vshrl.u32 %v3481_v20, 16  ;;  %v1768_v42 = vrot.slane %v1766_v6, 1  ;;  %v1888_v11 = vrot.slane %v3481_v20, 1 }
 0x2cc   : > { %v1301_v3 = vmax.f32 %v1268_v58, 0.0 }
 0x2cd   : > { %v1763_v23 = vrot.slane %v1761_v19, 1  ;;  %v1890_v52 = vsel %vm801_vm3, %v1888_v11, %v1889_v50  ;;  %2211 = vmatpush.bf16.msra.mxu1 %v2641_v59  ;;  %2650 = vmatpush.bf16.msra.mxu3 %v2641_v59  ;;  %v1864_v19 = vrot.slane %v3470_v55, 1 }
 0x2ce   : > { %2042 = vrot.lane.b32.xlu1 %v3494_v27, %s2681_s27  ;;  %v1333_v8 = vpack.c.bf16 %v1301_v3, %v1301_v3 }
 0x2cf   : > { %v1764_v39 = vor.u32 %v1763_v23, %v1759_v28  ;;  %v1865_v28 = vrot.slane %v3491_v17, 1 }
 0x2d0   : > { %v1397_v32 = vunpack.c.l.b16 %v1333_v8 }
 0x2d1   : > { %v1769_v41 = vsel %vm528_vm4, %v1764_v39, %v1768_v42  ;;  %2212 = vmatpush.bf16.msra.mxu1 %v2640_v21  ;;  %2651 = vmatpush.bf16.msra.mxu3 %v2640_v21  ;;  %v1866_v30 = vsel %vm801_vm3, %v1864_v19, %v1865_v28 }
 0x2d2   : > { %1810 = vrot.lane.b32.xlu2 %v1769_v41, %s2678_s25  ;;  %1904 = vrot.lane.b32.xlu0 %v1863_v44, %s2677_s24  ;;  %v1413_v45 = vpack.c.b16 %v1397_v32, %v1396_v53 }
 0x2d4   : > { %v1520_v6 = vshrl.u32 %v1413_v45, 16  ;;  %v1523_v42 = vshll.u32 %v1413_v45, 16 }
 0x2d5   : > { %2213 = vmatpush.bf16.msra.mxu1 %v2639_v49  ;;  %2652 = vmatpush.bf16.msra.mxu3 %v2639_v49 }
 0x2d6   : > { %1794 = vrot.lane.b32.xlu1 %v1673_v24, %s2678_s25  ;;  %v1522_v39 = vrot.slane %v1520_v6, 7 }
 0x2d8   : > { %v1525_v40 = vor.u32 %v1523_v42, %v1522_v39 }
 0x2da   : > { %2010 = vrot.lane.b32.xlu0 %v3466_v26, %s2680_s26  ;;  %v3554_v17 = vsel %vm2732_vm2, 0, %v1525_v40 }
 0x2db   : > { %v1891_v44 = vrot.slane %v3554_v17, 1  ;;  %v1773_v18 = vshll.u32 %v3554_v17, 16  ;;  %v1771_v10 = vshrl.u32 %v3554_v17, 16 }
 0x2dd   : > { %v1775_v60 = vrot.slane %v1773_v18, 1 }
 0x2df   : > { %v1776_v34 = vor.u32 %v1775_v60, %v1771_v10 }
 0x2e2   : > { %1922 = vrot.lane.b32.xlu0 %v1890_v52, %s2677_s24 }
 0x2f8   : > { %v1917_v9 = vpop.permute.xlu1 %1916 }
 0x2f9   : > { %v1919_v7 = vpop.permute.xlu2 %1918 }
 0x2fc   : > { %v1805_v61 = vpop.permute.xlu0 %1804 }
 0x2fd   : > { %v1949_v31 = vsel %vm887_vm5, %v3337_v12, %v1805_v61 }
 0x2fe   : > { %v3535_v15 = vsel %vm922_vm6, %v1949_v31, %v1917_v9 }
 0x2ff   : > { %2028 = vrot.lane.b32.xlu0 %v3535_v15, %s2680_s26  ;;  %2058 = vrot.lane.b32.xlu2 %v3535_v15, %s2681_s27 }
 0x300   : > { %v1903_v12 = vpop.permute.xlu1 %1902 }
 0x301   : > { %v1909_v22 = vpop.permute.xlu2 %1908 }
 0x304   : > { %v1791_v0 = vpop.permute.xlu0 %1790 }
 0x305   : > { %v1935_v23 = vsel %vm887_vm5, %v3341_v14, %v1791_v0  ;;  %v1589_v14 = vsel %vm2732_vm2, %v1522_v39, 0 }
 0x306   : > { %v3547_v47 = vsel %vm922_vm6, %v1935_v23, %v1903_v12  ;;  %v1892_v11 = vrot.slane %v1589_v14, 1  ;;  %v1778_v56 = vshll.u32 %v1589_v14, 16 }
 0x307   : > { %1906 = vrot.lane.b32.xlu2 %v1866_v30, %s2677_s24  ;;  %2044 = vrot.lane.b32.xlu0 %v3547_v47, %s2681_s27 }
 0x308   : > { %v1893_v52 = vsel %vm801_vm3, %v1891_v44, %v1892_v11  ;;  %v1780_v63 = vrot.slane %v1778_v56, 1 }
 0x309   : > { %v2007_v41 = vpop.permute.xlu2 %2006 }
 0x30a   : > { %v2069_v37 = vsel %vm1038_vm8, %v2999_v51, %v2007_v41  ;;  %v1781_v4 = vsel %vm528_vm4, %v1776_v34, %v1780_v63 }
 0x30c   : > { %v1797_v25 = vpop.permute.xlu0 %1796 }
 0x30f   : > { %2012 = vrot.lane.b32.xlu2 %v3494_v27, %s2680_s26 }
 0x311   : > { %v1793_v13 = vpop.permute.xlu2 %1792 }
 0x314   : > { %v2023_v48 = vpop.permute.xlu0 %2022 }
 0x315   : > { %v1807_v24 = vpop.permute.xlu1 %1806 }
 0x316   : > { %v1951_v50 = vsel %vm887_vm5, %v3380_v29, %v1807_v24  ;;  %v1941_v29 = vsel %vm887_vm5, %v3360_v1, %v1797_v25 }
 0x317   : > { %v3566_v54 = vsel %vm922_vm6, %v1951_v50, %v1919_v7  ;;  %1924 = vrot.lane.b32.xlu2 %v1893_v52, %s2677_s24  ;;  %v1973_v57 = vsel %vm922_vm6, %v1941_v29, %v1909_v22 }
 0x318   : > { %2060 = vrot.lane.b32.xlu1 %v3566_v54, %s2681_s27  ;;  %2030 = vrot.lane.b32.xlu0 %v3566_v54, %s2680_s26  ;;  %v2085_v43 = vsel %vm1038_vm8, %v1973_v57, %v2023_v48 }
 0x319   : > { %v2025_v51 = vpop.permute.xlu2 %2024 }
 0x31a   : > { %v2087_v53 = vsel %vm1038_vm8, %v3391_v35, %v2025_v51 }
 0x31c   : > { %v2039_v58 = vpop.permute.xlu0 %2038 }
 0x31d   : > { %v2101_v59 = vsel %vm1071_vm9, %v2069_v37, %v2039_v58 }
 0x31e   : > { %v2055_v3 = vpop.permute.xlu1 %2054  ;;  %2599 = vmatmul.msk.bf16.vlgmr.msra.gmra.mxu1 %vm1144_vm10, %v2101_v59 }
 0x31f   : > { %v2117_v8 = vsel %vm1071_vm9, %v2085_v43, %v2055_v3  ;;  %2014 = vrot.lane.b32.xlu2 %v3547_v47, %s2680_s26 }
 0x320   : > { %1812 = vrot.lane.b32.xlu1 %v1781_v4, %s2678_s25  ;;  %2607 = vmatmul.msk.bf16.vlgmr.msra.gmra.mxu3 %vm1144_vm10, %v2117_v8 }
 0x321   : > { %v2041_v2 = vpop.permute.xlu2 %2040 }
 0x326   : > { %v2009_v1 = vpop.permute.xlu1 %2008 }
 0x327   : > { %v2071_v21 = vsel %vm1038_vm8, %v3429_v33, %v2009_v1  ;;  %v228_v1 = vld [vmem:[%s2726_s23 + $0x8] sm:$0xff]  }
 0x328   : > { %v2103_v7 = vsel %vm1071_vm9, %v2071_v21, %v2041_v2 }
 0x32e   : > { %2600 = vmatmul.msk.bf16.gmra.mxu1 %vm1144_vm10, %v2103_v7 }
 0x330   : > { %v1921_v9 = vpop.permute.xlu1 %1920 }
 0x334   : > { %v1809_v32 = vpop.permute.xlu0 %1808 }
 0x335   : > { %v1953_v61 = vsel %vm887_vm5, %v3445_v36, %v1809_v32  ;;  %v1937_v36 = vsel %vm887_vm5, %v3402_v5, %v1793_v13  ;;  %v1811_v5 = vpop.permute.xlu2 %1810  ;;  %v226_v13 = vld [vmem:[%s2726_s23] sm:$0xff]  }
 0x336   : > { %v3595_v49 = vsel %vm922_vm6, %v1953_v61, %v1921_v9  ;;  %v1955_v23 = vsel %vm887_vm5, %v3481_v20, %v1811_v5  ;;  %v2295_v10 = vunpack.c.l.bf16 %v226_v13  ;;  %v2297_v9 = vunpack.c.l.bf16 %v228_v1 }
 0x337   : > { %2062 = vrot.lane.b32.xlu1 %v3595_v49, %s2681_s27 }
 0x338   : > { %v2027_v45 = vpop.permute.xlu1 %2026 }
 0x33c   : > { %v2057_v33 = vpop.permute.xlu0 %2056 }
 0x33d   : > { %v2119_v31 = vsel %vm1071_vm9, %v2087_v53, %v2057_v33 }
 0x33e   : > { %2608 = vmatmul.msk.bf16.gmra.mxu3 %vm1144_vm10, %v2119_v31 }
 0x33f   : > { %2032 = vrot.lane.b32.xlu1 %v3595_v49, %s2680_s26 }
 0x340   : > { %v2043_v0 = vpop.permute.xlu1 %2042 }
 0x344   : > { %v1905_v19 = vpop.permute.xlu0 %1904 }
 0x345   : > { %v3608_v6 = vsel %vm922_vm6, %v1937_v36, %v1905_v19 }
 0x346   : > { %2046 = vrot.lane.b32.xlu0 %v3608_v6, %s2681_s27 }
 0x348   : > { %v1795_v25 = vpop.permute.xlu1 %1794 }
 0x349   : > { %v1939_v20 = vsel %vm887_vm5, %v3470_v55, %v1795_v25 }
 0x34c   : > { %v2011_v22 = vpop.permute.xlu0 %2010 }
 0x34d   : > { %v2073_v28 = vsel %vm1038_vm8, %v3410_v46, %v2011_v22  ;;  %v2089_v46 = vsel %vm1038_vm8, %v3419_v38, %v2027_v45 }
 0x34e   : > { %2016 = vrot.lane.b32.xlu0 %v3608_v6, %s2680_s26  ;;  %v2105_v12 = vsel %vm1071_vm9, %v2073_v28, %v2043_v0 }
 0x34f   : > { %2601 = vmatmul.msk.bf16.gmra.mxu1 %vm1144_vm10, %v2105_v12  ;;  %v2298_v12 = vunpack.c.h.bf16 %v228_v1 }
 0x354   : > { %v1923_v30 = vpop.permute.xlu0 %1922 }
 0x355   : > { %v3621_v39 = vsel %vm922_vm6, %v1955_v23, %v1923_v30 }
 0x356   : > { %2064 = vrot.lane.b32.xlu2 %v3621_v39, %s2681_s27 }
 0x359   : > { %v2059_v42 = vpop.permute.xlu2 %2058 }
 0x35a   : > { %v2121_v40 = vsel %vm1071_vm9, %v2089_v46, %v2059_v42 }
 0x35b   : > { %2609 = vmatmul.msk.bf16.gmra.mxu3 %vm1144_vm10, %v2121_v40 }
 0x35e   : > { %2034 = vrot.lane.b32.xlu2 %v3621_v39, %s2680_s26 }
 0x361   : > { %v1907_v41 = vpop.permute.xlu2 %1906 }
 0x362   : > { %v3634_v14 = vsel %vm922_vm6, %v1939_v20, %v1907_v41 }
 0x363   : > { %2048 = vrot.lane.b32.xlu1 %v3634_v14, %s2681_s27 }
 0x366   : > { %2050 = vrot.lane.b32.xlu2 %v1973_v57, %s2681_s27 }
 0x369   : > { %v2013_v55 = vpop.permute.xlu2 %2012 }
 0x36a   : > { %v2075_v44 = vsel %vm1038_vm8, %v3466_v26, %v2013_v55 }
 0x36b   : > { %2018 = vrot.lane.b32.xlu1 %v3634_v14, %s2680_s26 }
 0x36e   : > { %2052 = vrot.lane.b32.xlu2 %v3391_v35, %s2681_s27 }
 0x371   : > { %v2029_v38 = vpop.permute.xlu0 %2028  ;;  %v1925_v52 = vpop.permute.xlu2 %1924 }
 0x372   : > { %v2091_v24 = vsel %vm1038_vm8, %v3463_v16, %v2029_v38  ;;  %v3660_v16 = vld [vmem:[%s3820_s4] ss:$0 sm:$0xff] }
 0x373   : > { %2020 = vrot.lane.b32.xlu1 %v1973_v57, %s2680_s26  ;;  %v2296_v57 = vunpack.c.h.bf16 %v226_v13 }
 0x379   : > { %v2045_v18 = vpop.permute.xlu0 %2044  ;;  %v2015_v28 = vpop.permute.xlu2 %2014 }
 0x37a   : > { %v2107_v48 = vsel %vm1071_vm9, %v2075_v44, %v2045_v18  ;;  %v2077_v40 = vsel %vm1038_vm8, %v3494_v27, %v2015_v28  ;;  %v244_v44 = vld [vmem:[%s2726_s23 + $0x48] sm:$0xff]  }
 0x37b   : > { %2602 = vmatmul.msk.bf16.gmra.mxu1 %vm1144_vm10, %v2107_v48 }
 0x38a   : > { %v2061_v11 = vpop.permute.xlu1 %2060  ;;  %v2031_v4 = vpop.permute.xlu0 %2030 }
 0x38b   : > { %v2123_v35 = vsel %vm1071_vm9, %v2091_v24, %v2061_v11  ;;  %v2093_v7 = vsel %vm1038_vm8, %v3535_v15, %v2031_v4  ;;  %v2314_v11 = vunpack.c.h.bf16 %v244_v44 }
 0x38c   : > { %2610 = vmatmul.msk.bf16.gmra.mxu3 %vm1144_vm10, %v2123_v35  ;;  %v230_v35 = vld [vmem:[%s2726_s23 + $0x10] sm:$0xff]  }
 0x392   : > { %v1813_v50 = vpop.permute.xlu1 %1812 }
 0x393   : > { %v1957_v26 = vsel %vm887_vm5, %v3554_v17, %v1813_v50  ;;  %v242_v17 = vld [vmem:[%s2726_s23 + $0x40] sm:$0xff]  }
 0x394   : > { %v1989_v60 = vsel %vm922_vm6, %v1957_v26, %v1925_v52  ;;  %v2311_v58 = vunpack.c.l.bf16 %v242_v17  ;;  %v2312_v61 = vunpack.c.h.bf16 %v242_v17  ;;  %v2299_v26 = vunpack.c.l.bf16 %v230_v35 }
 0x395   : > { %2066 = vrot.lane.b32.xlu0 %v1989_v60, %s2681_s27 }
 0x39b   : > { %v2215_v56 = vpop.f32.mrf.mxu1 }
 0x39c   : > { %v2216_v29 = vadd.f32 %v3660_v16, %v2215_v56 }
 0x39d   : > { %2036 = vrot.lane.b32.xlu0 %v1989_v60, %s2680_s26 }
 0x39e   : > { %v2327_v34 = vadd.f32 %v2295_v10, %v2216_v29 }
 0x3a0   : > { %v2359_v37 = vmax.f32 %v2327_v34, 0.0 }
 0x3a2   : > { %2391 = vst.msk [vmem:[%s3668_s12] sm:$0xff] %vm887_vm5, %v2359_v37  ;;  %v2300_v37 = vunpack.c.h.bf16 %v230_v35 }
 0x3a3   : > { %v2217_v63 = vpop.f32.mrf.mxu1  ;;  %v2255_v43 = vpop.f32.mrf.mxu3 }
 0x3a4   : > { %v2218_v3 = vadd.f32 %v3660_v16, %v2217_v63  ;;  %v2256_v59 = vadd.f32 %v3660_v16, %v2255_v43 }
 0x3a6   : > { %v2328_v8 = vadd.f32 %v2296_v57, %v2218_v3  ;;  %v2343_v51 = vadd.f32 %v2311_v58, %v2256_v59 }
 0x3a8   : > { %v2360_v21 = vmax.f32 %v2328_v8, 0.0  ;;  %v2375_v2 = vmax.f32 %v2343_v51, 0.0  ;;  %v246_v8 = vld [vmem:[%s2726_s23 + $0x50] sm:$0xff]  }
 0x3a9   : > { %v2063_v32 = vpop.permute.xlu1 %2062  ;;  %v2315_v1 = vunpack.c.l.bf16 %v246_v8 }
 0x3aa   : > { %2392 = vst.msk [vmem:[%s3668_s12 + $0x8] sm:$0xff] %vm887_vm5, %v2360_v21  ;;  %v2125_v53 = vsel %vm1071_vm9, %v2093_v7, %v2063_v32 }
 0x3ab   : > { %2407 = vst.msk [vmem:[%s3668_s12 + $0x80] sm:$0xff] %vm887_vm5, %v2375_v2  ;;  %v2220_v33 = vpop.f32.mrf.mxu1  ;;  %v2257_v31 = vpop.f32.mrf.mxu3  ;;  %2611 = vmatmul.msk.bf16.gmra.mxu3 %vm1144_vm10, %v2125_v53  ;;  %v2316_v53 = vunpack.c.h.bf16 %v246_v8  ;;  %v252_v8 = vld [vmem:[%s2726_s23 + $0x68] sm:$0xff]  }
 0x3ac   : > { %v2221_v45 = vadd.f32 %v3660_v16, %v2220_v33  ;;  %v2258_v36 = vadd.f32 %v3660_v16, %v2257_v31 }
 0x3ae   : > { %v2329_v15 = vadd.f32 %v2297_v9, %v2221_v45  ;;  %v2344_v19 = vadd.f32 %v2312_v61, %v2258_v36 }
 0x3b0   : > { %v2361_v22 = vmax.f32 %v2329_v15, 0.0  ;;  %v2376_v0 = vmax.f32 %v2344_v19, 0.0  ;;  %v2065_v41 = vpop.permute.xlu2 %2064 }
 0x3b1   : > { %v2033_v23 = vpop.permute.xlu1 %2032 }
 0x3b2   : > { %2393 = vst.msk [vmem:[%s3668_s12 + $0x10] sm:$0xff] %vm887_vm5, %v2361_v22  ;;  %v2095_v42 = vsel %vm1038_vm8, %v3566_v54, %v2033_v23  ;;  %v2313_v54 = vunpack.c.l.bf16 %v244_v44  ;;  %v232_v22 = vld [vmem:[%s2726_s23 + $0x18] sm:$0xff]  }
 0x3b3   : > { %2408 = vst.msk [vmem:[%s3668_s12 + $0x88] sm:$0xff] %vm887_vm5, %v2376_v0  ;;  %v2222_v5 = vpop.f32.mrf.mxu1  ;;  %v2127_v55 = vsel %vm1071_vm9, %v2095_v42, %v2065_v41  ;;  %v2302_v42 = vunpack.c.h.bf16 %v232_v22  ;;  %v248_v44 = vld [vmem:[%s2726_s23 + $0x58] sm:$0xff]  }
 0x3b4   : > { %v2223_v30 = vadd.f32 %v3660_v16, %v2222_v5  ;;  %v2318_v35 = vunpack.c.h.bf16 %v248_v44 }
 0x3b6   : > { %v2330_v46 = vadd.f32 %v2298_v12, %v2223_v30  ;;  %v2301_v12 = vunpack.c.l.bf16 %v232_v22  ;;  %v236_v22 = vld [vmem:[%s2726_s23 + $0x28] sm:$0xff]  }
 0x3b8   : > { %v2362_v25 = vmax.f32 %v2330_v46, 0.0  ;;  %v2047_v20 = vpop.permute.xlu0 %2046  ;;  %v2035_v51 = vpop.permute.xlu2 %2034 }
 0x3b9   : > { %v2109_v38 = vsel %vm1071_vm9, %v2077_v40, %v2047_v20  ;;  %v2097_v41 = vsel %vm1038_vm8, %v3595_v49, %v2035_v51 }
 0x3ba   : > { %2394 = vst.msk [vmem:[%s3668_s12 + $0x18] sm:$0xff] %vm887_vm5, %v2362_v25  ;;  %2603 = vmatmul.msk.bf16.gmra.mxu1 %vm1144_vm10, %v2109_v38 }
 0x3bb   : > { %2612 = vmatmul.msk.bf16.gmra.mxu3 %vm1144_vm10, %v2127_v55 }
 0x3c0   : > { %v2017_v17 = vpop.permute.xlu0 %2016  ;;  %v2051_v61 = vpop.permute.xlu2 %2050 }
 0x3c1   : > { %v2260_v18 = vpop.f32.mrf.mxu3  ;;  %v2079_v58 = vsel %vm1038_vm8, %v3547_v47, %v2017_v17 }
 0x3c2   : > { %v2261_v27 = vadd.f32 %v3660_v16, %v2260_v18 }
 0x3c4   : > { %v2345_v48 = vadd.f32 %v2313_v54, %v2261_v27  ;;  %v2317_v54 = vunpack.c.l.bf16 %v248_v44 }
 0x3c6   : > { %v2377_v24 = vmax.f32 %v2345_v48, 0.0 }
 0x3c8   : > { %2409 = vst.msk [vmem:[%s3668_s12 + $0x90] sm:$0xff] %vm887_vm5, %v2377_v24  ;;  %v2053_v0 = vpop.permute.xlu2 %2052 }
 0x3c9   : > { %v2262_v50 = vpop.f32.mrf.mxu3 }
 0x3ca   : > { %v2263_v52 = vadd.f32 %v3660_v16, %v2262_v50 }
 0x3cc   : > { %v2346_v60 = vadd.f32 %v2314_v11, %v2263_v52  ;;  %v2225_v13 = vpop.f32.mrf.mxu1 }
 0x3cd   : > { %v2226_v10 = vadd.f32 %v3660_v16, %v2225_v13 }
 0x3ce   : > { %v2378_v56 = vmax.f32 %v2346_v60, 0.0 }
 0x3cf   : > { %v2331_v29 = vadd.f32 %v2299_v26, %v2226_v10  ;;  %v250_v10 = vld [vmem:[%s2726_s23 + $0x60] sm:$0xff]  }
 0x3d0   : > { %2410 = vst.msk [vmem:[%s3668_s12 + $0x98] sm:$0xff] %vm887_vm5, %v2378_v56 }
 0x3d1   : > { %v2363_v34 = vmax.f32 %v2331_v29, 0.0 }
 0x3d3   : > { %2395 = vst.msk [vmem:[%s3668_s12 + $0x20] sm:$0xff] %vm887_vm5, %v2363_v34 }
 0x3d4   : > { %v2227_v57 = vpop.f32.mrf.mxu1 }
 0x3d5   : > { %v2228_v63 = vadd.f32 %v3660_v16, %v2227_v57  ;;  %v2049_v43 = vpop.permute.xlu1 %2048 }
 0x3d6   : > { %v2111_v3 = vsel %vm1071_vm9, %v2079_v58, %v2049_v43 }
 0x3d7   : > { %v2332_v59 = vadd.f32 %v2300_v37, %v2228_v63  ;;  %2604 = vmatmul.msk.bf16.gmra.mxu1 %vm1144_vm10, %v2111_v3  ;;  %v234_v37 = vld [vmem:[%s2726_s23 + $0x20] sm:$0xff]  }
 0x3d8   : > { %v2303_v58 = vunpack.c.l.bf16 %v234_v37 }
 0x3d9   : > { %v2364_v4 = vmax.f32 %v2332_v59, 0.0 }
 0x3db   : > { %2396 = vst.msk [vmem:[%s3668_s12 + $0x28] sm:$0xff] %vm887_vm5, %v2364_v4 }
 0x3dd   : > { %v2019_v47 = vpop.permute.xlu1 %2018 }
 0x3de   : > { %v2265_v21 = vpop.f32.mrf.mxu3  ;;  %v2081_v32 = vsel %vm1038_vm8, %v3608_v6, %v2019_v47  ;;  %v2304_v47 = vunpack.c.h.bf16 %v234_v37 }
 0x3df   : > { %v2266_v2 = vadd.f32 %v3660_v16, %v2265_v21  ;;  %v2113_v31 = vsel %vm1071_vm9, %v2081_v32, %v2051_v61  ;;  %v2321_v21 = vunpack.c.l.bf16 %v252_v8 }
 0x3e1   : > { %v2347_v7 = vadd.f32 %v2315_v1, %v2266_v2 }
 0x3e3   : > { %v2379_v9 = vmax.f32 %v2347_v7, 0.0 }
 0x3e5   : > { %2411 = vst.msk [vmem:[%s3668_s12 + $0xa0] sm:$0xff] %vm887_vm5, %v2379_v9  ;;  %v2021_v19 = vpop.permute.xlu1 %2020 }
 0x3e6   : > { %v2267_v33 = vpop.f32.mrf.mxu3  ;;  %v2083_v6 = vsel %vm1038_vm8, %v3634_v14, %v2021_v19 }
 0x3e7   : > { %v2268_v45 = vadd.f32 %v3660_v16, %v2267_v33  ;;  %2605 = vmatmul.msk.bf16.gmra.mxu1 %vm1144_vm10, %v2113_v31  ;;  %v2115_v28 = vsel %vm1071_vm9, %v2083_v6, %v2053_v0  ;;  %v2305_v0 = vunpack.c.l.bf16 %v236_v22 }
 0x3e9   : > { %v2348_v36 = vadd.f32 %v2316_v53, %v2268_v45  ;;  %v2322_v45 = vunpack.c.h.bf16 %v252_v8 }
 0x3eb   : > { %v2380_v15 = vmax.f32 %v2348_v36, 0.0 }
 0x3ed   : > { %2412 = vst.msk [vmem:[%s3668_s12 + $0xa8] sm:$0xff] %vm887_vm5, %v2380_v15 }
 0x3f7   : > { %2606 = vmatmul.msk.bf16.gmra.mxu1 %vm1144_vm10, %v2115_v28 }
 0x3f8   : > { %v2230_v5 = vpop.f32.mrf.mxu1 }
 0x3f9   : > { %v2231_v23 = vadd.f32 %v3660_v16, %v2230_v5 }
 0x3fb   : > { %v2333_v30 = vadd.f32 %v2301_v12, %v2231_v23 }
 0x3fd   : > { %v2365_v46 = vmax.f32 %v2333_v30, 0.0  ;;  %v2306_v30 = vunpack.c.h.bf16 %v236_v22 }
 0x3ff   : > { %2397 = vst.msk [vmem:[%s3668_s12 + $0x30] sm:$0xff] %vm887_vm5, %v2365_v46 }
 0x400   : > { %v2232_v40 = vpop.f32.mrf.mxu1 }
 0x401   : > { %v2233_v14 = vadd.f32 %v3660_v16, %v2232_v40 }
 0x403   : > { %v2334_v25 = vadd.f32 %v2302_v42, %v2233_v14  ;;  %v238_v14 = vld [vmem:[%s2726_s23 + $0x30] sm:$0xff]  }
 0x405   : > { %v2366_v20 = vmax.f32 %v2334_v25, 0.0 }
 0x407   : > { %v2067_v38 = vpop.permute.xlu0 %2066  ;;  %2398 = vst.msk [vmem:[%s3668_s12 + $0x38] sm:$0xff] %vm887_vm5, %v2366_v20  ;;  %v2307_v20 = vunpack.c.l.bf16 %v238_v14 }
 0x408   : > { %v2129_v55 = vsel %vm1071_vm9, %v2097_v41, %v2067_v38 }
 0x409   : > { %2613 = vmatmul.msk.bf16.gmra.mxu3 %vm1144_vm10, %v2129_v55 }
 0x40f   : > { %v2270_v18 = vpop.f32.mrf.mxu3  ;;  %v2037_v24 = vpop.permute.xlu0 %2036 }
 0x410   : > { %v2271_v27 = vadd.f32 %v3660_v16, %v2270_v18  ;;  %v2099_v49 = vsel %vm1038_vm8, %v3621_v39, %v2037_v24  ;;  %v2319_v39 = vunpack.c.l.bf16 %v250_v10  ;;  %v240_v24 = vld [vmem:[%s2726_s23 + $0x38] sm:$0xff]  }
 0x411   : > { %v2130_v26 = vsel %vm1071_vm9, %v2099_v49, %v3292_v62  ;;  %v2320_v62 = vunpack.c.h.bf16 %v250_v10  ;;  %v2309_v49 = vunpack.c.l.bf16 %v240_v24 }
 0x412   : > { %v2349_v48 = vadd.f32 %v2317_v54, %v2271_v27  ;;  %v2308_v54 = vunpack.c.h.bf16 %v238_v14 }
 0x414   : > { %v2381_v11 = vmax.f32 %v2349_v48, 0.0 }
 0x416   : > { %2413 = vst.msk [vmem:[%s3668_s12 + $0xb0] sm:$0xff] %vm887_vm5, %v2381_v11 }
 0x417   : > { %v2272_v50 = vpop.f32.mrf.mxu3 }
 0x418   : > { %v2273_v52 = vadd.f32 %v3660_v16, %v2272_v50 }
 0x419   : > { %2614 = vmatmul.msk.bf16.gmra.mxu3 %vm1144_vm10, %v2130_v26 }
 0x41a   : > { %v2350_v60 = vadd.f32 %v2318_v35, %v2273_v52 }
 0x41c   : > { %v2382_v13 = vmax.f32 %v2350_v60, 0.0  ;;  %v2310_v60 = vunpack.c.h.bf16 %v240_v24 }
 0x41e   : > { %2414 = vst.msk [vmem:[%s3668_s12 + $0xb8] sm:$0xff] %vm887_vm5, %v2382_v13 }
 0x42e   : > { %v2275_v56 = vpop.f32.mrf.mxu3 }
 0x42f   : > { %v2276_v29 = vadd.f32 %v3660_v16, %v2275_v56 }
 0x431   : > { %v2351_v34 = vadd.f32 %v2319_v39, %v2276_v29  ;;  %v254_v29 = vld [vmem:[%s2726_s23 + $0x70] sm:$0xff]  }
 0x433   : > { %v2383_v17 = vmax.f32 %v2351_v34, 0.0  ;;  %v2323_v34 = vunpack.c.l.bf16 %v254_v29 }
 0x435   : > { %2415 = vst.msk [vmem:[%s3668_s12 + $0xc0] sm:$0xff] %vm887_vm5, %v2383_v17 }
 0x436   : > { %v2277_v57 = vpop.f32.mrf.mxu3 }
 0x437   : > { %v2278_v63 = vadd.f32 %v3660_v16, %v2277_v57  ;;  %v2235_v43 = vpop.f32.mrf.mxu1 }
 0x438   : > { %v2236_v3 = vadd.f32 %v3660_v16, %v2235_v43 }
 0x439   : > { %v2352_v59 = vadd.f32 %v2320_v62, %v2278_v63 }
 0x43a   : > { %v2335_v4 = vadd.f32 %v2303_v58, %v2236_v3  ;;  %v2324_v58 = vunpack.c.h.bf16 %v254_v29 }
 0x43b   : > { %v2384_v51 = vmax.f32 %v2352_v59, 0.0  ;;  %v256_v59 = vld [vmem:[%s2726_s23 + $0x78] sm:$0xff]  }
 0x43c   : > { %v2367_v1 = vmax.f32 %v2335_v4, 0.0  ;;  %v2325_v8 = vunpack.c.l.bf16 %v256_v59 }
 0x43d   : > { %2416 = vst.msk [vmem:[%s3668_s12 + $0xc8] sm:$0xff] %vm887_vm5, %v2384_v51 }
 0x43e   : > { %2399 = vst.msk [vmem:[%s3668_s12 + $0x40] sm:$0xff] %vm887_vm5, %v2367_v1  ;;  %v2280_v2 = vpop.f32.mrf.mxu3 }
 0x43f   : > { %v2281_v7 = vadd.f32 %v3660_v16, %v2280_v2  ;;  %v2237_v32 = vpop.f32.mrf.mxu1 }
 0x440   : > { %v2238_v9 = vadd.f32 %v3660_v16, %v2237_v32 }
 0x441   : > { %v2353_v61 = vadd.f32 %v2321_v21, %v2281_v7 }
 0x442   : > { %v2336_v53 = vadd.f32 %v2304_v47, %v2238_v9  ;;  %v2326_v47 = vunpack.c.h.bf16 %v256_v59 }
 0x443   : > { %v2385_v33 = vmax.f32 %v2353_v61, 0.0 }
 0x444   : > { %v2368_v31 = vmax.f32 %v2336_v53, 0.0 }
 0x445   : > { %2417 = vst.msk [vmem:[%s3668_s12 + $0xd0] sm:$0xff] %vm887_vm5, %v2385_v33 }
 0x446   : > { %2400 = vst.msk [vmem:[%s3668_s12 + $0x48] sm:$0xff] %vm887_vm5, %v2368_v31  ;;  %v2282_v36 = vpop.f32.mrf.mxu3 }
 0x447   : > { %v2283_v15 = vadd.f32 %v3660_v16, %v2282_v36 }
 0x449   : > { %v2354_v19 = vadd.f32 %v2322_v45, %v2283_v15 }
 0x44b   : > { %v2386_v6 = vmax.f32 %v2354_v19, 0.0 }
 0x44d   : > { %2418 = vst.msk [vmem:[%s3668_s12 + $0xd8] sm:$0xff] %vm887_vm5, %v2386_v6 }
 0x454   : > { %v2240_v28 = vpop.f32.mrf.mxu1 }
 0x455   : > { %v2241_v12 = vadd.f32 %v3660_v16, %v2240_v28 }
 0x457   : > { %v2337_v5 = vadd.f32 %v2305_v0, %v2241_v12 }
 0x459   : > { %v2369_v23 = vmax.f32 %v2337_v5, 0.0 }
 0x45b   : > { %2401 = vst.msk [vmem:[%s3668_s12 + $0x50] sm:$0xff] %vm887_vm5, %v2369_v23 }
 0x45c   : > { %v2242_v46 = vpop.f32.mrf.mxu1 }
 0x45d   : > { %v2243_v42 = vadd.f32 %v3660_v16, %v2242_v46 }
 0x45f   : > { %v2338_v40 = vadd.f32 %v2306_v30, %v2243_v42 }
 0x461   : > { %v2370_v25 = vmax.f32 %v2338_v40, 0.0 }
 0x463   : > { %2402 = vst.msk [vmem:[%s3668_s12 + $0x58] sm:$0xff] %vm887_vm5, %v2370_v25 }
 0x464   : > { %v2245_v41 = vpop.f32.mrf.mxu1 }
 0x465   : > { %v2246_v38 = vadd.f32 %v3660_v16, %v2245_v41 }
 0x467   : > { %v2339_v55 = vadd.f32 %v2307_v20, %v2246_v38 }
 0x469   : > { %v2371_v44 = vmax.f32 %v2339_v55, 0.0 }
 0x46b   : > { %2403 = vst.msk [vmem:[%s3668_s12 + $0x60] sm:$0xff] %vm887_vm5, %v2371_v44 }
 0x46c   : > { %v2247_v18 = vpop.f32.mrf.mxu1 }
 0x46d   : > { %v2248_v27 = vadd.f32 %v3660_v16, %v2247_v18 }
 0x46f   : > { %v2340_v48 = vadd.f32 %v2308_v54, %v2248_v27 }
 0x471   : > { %v2372_v11 = vmax.f32 %v2340_v48, 0.0 }
 0x473   : > { %2404 = vst.msk [vmem:[%s3668_s12 + $0x68] sm:$0xff] %vm887_vm5, %v2372_v11 }
 0x474   : > { %v2250_v35 = vpop.f32.mrf.mxu1 }
 0x475   : > { %v2251_v50 = vadd.f32 %v3660_v16, %v2250_v35 }
 0x477   : > { %v2341_v52 = vadd.f32 %v2309_v49, %v2251_v50 }
 0x479   : > { %v2373_v26 = vmax.f32 %v2341_v52, 0.0 }
 0x47b   : > { %2405 = vst.msk [vmem:[%s3668_s12 + $0x70] sm:$0xff] %vm887_vm5, %v2373_v26 }
 0x47c   : > { %v2252_v13 = vpop.f32.mrf.mxu1 }
 0x47d   : > { %v2253_v10 = vadd.f32 %v3660_v16, %v2252_v13 }
 0x47f   : > { %v2342_v39 = vadd.f32 %v2310_v60, %v2253_v10 }
 0x481   : > { %v2374_v56 = vmax.f32 %v2342_v39, 0.0 }
 0x483   : > { %2406 = vst.msk [vmem:[%s3668_s12 + $0x78] sm:$0xff] %vm887_vm5, %v2374_v56 }
 0x48c   : > { %v2285_v17 = vpop.f32.mrf.mxu3 }
 0x48d   : > { %v2286_v37 = vadd.f32 %v3660_v16, %v2285_v17 }
 0x48f   : > { %v2355_v62 = vadd.f32 %v2323_v34, %v2286_v37 }
 0x491   : > { %v2387_v57 = vmax.f32 %v2355_v62, 0.0 }
 0x493   : > { %2419 = vst.msk [vmem:[%s3668_s12 + $0xe0] sm:$0xff] %vm887_vm5, %v2387_v57 }
 0x494   : > { %v2287_v63 = vpop.f32.mrf.mxu3 }
 0x495   : > { %v2288_v43 = vadd.f32 %v3660_v16, %v2287_v63 }
 0x497   : > { %v2356_v3 = vadd.f32 %v2324_v58, %v2288_v43 }
 0x499   : > { %v2388_v4 = vmax.f32 %v2356_v3, 0.0 }
 0x49b   : > { %2420 = vst.msk [vmem:[%s3668_s12 + $0xe8] sm:$0xff] %vm887_vm5, %v2388_v4 }
 0x49c   : > { %v2290_v51 = vpop.f32.mrf.mxu3 }
 0x49d   : > { %v2291_v1 = vadd.f32 %v3660_v16, %v2290_v51 }
 0x49f   : > { %v2357_v21 = vadd.f32 %v2325_v8, %v2291_v1 }
 0x4a1   : > { %v2389_v2 = vmax.f32 %v2357_v21, 0.0 }
 0x4a3   : > { %2421 = vst.msk [vmem:[%s3668_s12 + $0xf0] sm:$0xff] %vm887_vm5, %v2389_v2 }
 0x4a4   : > { %v2292_v7 = vpop.f32.mrf.mxu3 }
 0x4a5   : > { %v2293_v32 = vadd.f32 %v3660_v16, %v2292_v7 }
 0x4a7   : > { %v2358_v9 = vadd.f32 %v2326_v47, %v2293_v32 }
 0x4a9   : > { %v2390_v61 = vmax.f32 %v2358_v9, 0.0 }
 0x4ab   : > { %2422 = vst.msk [vmem:[%s3668_s12 + $0xf8] sm:$0xff] %vm887_vm5, %v2390_v61 }
 0x4ac PF: > { %s15_s18 = sadd.s32 1, %s2675_s18  }
 0x4ad   : > { %p12_p4 = scmp.ge.s32.totalorder %s15_s18, 4  }
 0x4af   :  { %14 = sbr.rel (!%p12_p4) target bundleno = 1 (0x1), region = 70 }

</bundles_post_ra>
